<compile_context>
chip_gen: v7x
topology: tpu7x:2x2x1
jax: 0.10.0
libtpu: 0.0.40
codegen_flags: <defaults>
</compile_context>

<pallas_src>
import functools

import numpy as np
import jax
import jax.numpy as jnp
from jax import lax
from jax.experimental import pallas as pl
from jax.experimental.pallas import tpu as pltpu


# ----------------------------------------------------------------------------
# helpers
# ----------------------------------------------------------------------------
def _vmem():
    return pl.BlockSpec(memory_space=pltpu.MemorySpace.VMEM)


def _head_selectors(H, C):
    """Static selector matrices so per-head reductions run as single MXU dots."""
    HC = H * C
    rows = np.arange(HC)
    # (HC, H): column h selects the channels of head h  -> per-head sum
    hsum = (rows[:, None] // C == np.arange(H)[None, :]).astype(np.float32)
    # (H, HC): row h broadcasts alpha[:, h] onto that head's channels
    hexp = np.ascontiguousarray(hsum.T)
    # (HC, C): averages the H head blocks channel-wise (concat=False -> head mean)
    hmean = ((rows[:, None] % C) == np.arange(C)[None, :]).astype(np.float32) / float(H)
    return jnp.asarray(hsum), jnp.asarray(hexp), jnp.asarray(hmean)


# contract over the edge axis (axis 0) of both operands: Gdst^T @ X without
# materializing the transposed (N, E) matrix.
_EDGE_CONTRACT = (((0,), (0,)), ((), ()))


# ----------------------------------------------------------------------------
# Fully fused KG_GNN kernel: 2x GATv2 layer + pooling + FNN + prediction head
# ----------------------------------------------------------------------------
def kg_gnn_kernel(*refs, n_gat, n_fc, negative_slope):
    it = iter(refs)
    x_ref = next(it)        # (N, F0)   input node features
    ew_ref = next(it)       # (E, 1)    edge weights
    gsrc_ref = next(it)     # (E, N)    one-hot src gather
    gdst_ref = next(it)     # (E, N)    one-hot dst gather (also used transposed for scatter)
    p_ref = next(it)        # (G, N)    normalized mean-pool matrix
    eye_ref = next(it)      # (E, E)    identity (lane-dense transposed alpha store)
    gat_refs = [[next(it) for _ in range(9)] for _ in range(n_gat)]
    fc_refs = [(next(it), next(it)) for _ in range(n_fc)]
    pw_ref = next(it)
    pb_ref = next(it)
    logits_ref = next(it)   # (G, num_classes)
    alpha_t_ref = next(it)  # (H, E)  attention of last layer, lane-dense
    emb_ref = next(it)      # (G, C_last) graph embedding

    gsrc = gsrc_ref[...]
    gdst = gdst_ref[...]
    ew = ew_ref[...]

    h = x_ref[...]
    for i in range(n_gat):
        (wl_ref, bl_ref, wr_ref, br_ref, att_ref,
         bias_ref, hsum_ref, hexp_ref, hmean_ref) = gat_refs[i]
        last = (i == n_gat - 1)

        # lin_l(x) / lin_r(x): (N, F) @ (F, H*C)
        xl = jnp.dot(h, wl_ref[...], preferred_element_type=jnp.float32) + bl_ref[...]
        xr = jnp.dot(h, wr_ref[...], preferred_element_type=jnp.float32) + br_ref[...]

        # gather to edges via one-hot matmuls (data never leaves VMEM)
        xj = jnp.dot(gsrc, xl, preferred_element_type=jnp.float32)   # x_j = lin_l(x)[src]
        xi = jnp.dot(gdst, xr, preferred_element_type=jnp.float32)   # x_i = lin_r(x)[dst]

        s = xi + xj
        s = jnp.where(s >= 0.0, s, negative_slope * s)                # LeakyReLU

        # per-head attention logits: (s * att) summed per head via one small MXU dot
        logits = jnp.dot(s * att_ref[...], hsum_ref[...],
                         preferred_element_type=jnp.float32)          # (E, H)

        # Softmax over incoming edges of each destination node, algebraically FUSED
        # with the edge-weight renormalization:
        #   alpha = exp(logit - m) * w / (sum_{dst} exp(logit - m) * w + 1e-16)
        # Global per-head max shift is used instead of PyG's per-segment max; softmax
        # is shift-invariant so this is exact unless one segment's logits sit ~80+
        # below the global max (f32 underflow) -- not the case for this model scale.
        m = jnp.max(logits, axis=0, keepdims=True)                    # (1, H)
        ex = jnp.exp(logits - m) * ew                                 # (E, H)
        denom = lax.dot_general(gdst, ex, _EDGE_CONTRACT,
                                preferred_element_type=jnp.float32) + 1e-16   # (N, H)
        # exact divide on the layer whose alpha is returned; EUP approx elsewhere
        inv = pl.reciprocal(denom, approx=not last)
        alpha = ex * jnp.dot(gdst, inv, preferred_element_type=jnp.float32)   # (E, H)

        if last:
            # lane-dense (H, E) store (E on the lane axis); wrapper transposes back.
            alpha_t_ref[...] = lax.dot_general(alpha, eye_ref[...], _EDGE_CONTRACT,
                                               preferred_element_type=jnp.float32)

        # messages x_j * alpha (per head) -> scatter-sum over dst -> head mean + bias
        scale = jnp.dot(alpha, hexp_ref[...], preferred_element_type=jnp.float32)  # (E, HC)
        agg = lax.dot_general(gdst, xj * scale, _EDGE_CONTRACT,
                              preferred_element_type=jnp.float32)                  # (N, HC)
        out = jnp.dot(agg, hmean_ref[...], preferred_element_type=jnp.float32)     # (N, C)
        out = out + bias_ref[...]
        if not last:
            out = jnp.maximum(out, 0.0)     # F.dropout (eval -> identity) then relu
        h = out

    # global_mean_pool (rows of P are already 1/deg-normalized)
    emb = jnp.dot(p_ref[...], h, preferred_element_type=jnp.float32)   # (G, C_last)
    emb_ref[...] = emb

    # FNN (Linear / ReLU between hidden layers / Dropout=identity) + prediction head
    g = emb
    for j in range(n_fc):
        w_ref, b_ref = fc_refs[j]
        g = jnp.dot(g, w_ref[...], preferred_element_type=jnp.float32) + b_ref[...]
        if j < n_fc - 1:
            g = jnp.maximum(g, 0.0)
    logits_ref[...] = (jnp.dot(g, pw_ref[...], preferred_element_type=jnp.float32)
                       + pb_ref[...])


# ----------------------------------------------------------------------------
# Parameter init (deterministic, synthetic)
# ----------------------------------------------------------------------------
def init_params(key, input_dim, num_gat_nodes, heads, num_fc_nodes, num_classes):
    params = {"gat": [], "fc": []}
    in_dim = input_dim
    for out_dim in num_gat_nodes:
        C = out_dim  # concat=False -> per-head channels == out_dim
        key, k1, k2, k3, k4, k5 = jax.random.split(key, 6)
        hsum, hexp, hmean = _head_selectors(heads, C)
        params["gat"].append({
            "Wl": 0.1 * jax.random.normal(k1, (in_dim, heads * C), jnp.float32),
            "bl": 0.1 * jax.random.normal(k2, (heads * C,), jnp.float32),
            "Wr": 0.1 * jax.random.normal(k3, (in_dim, heads * C), jnp.float32),
            "br": 0.1 * jax.random.normal(k4, (heads * C,), jnp.float32),
            "att": 0.1 * jax.random.normal(k5, (1, heads * C), jnp.float32),
            "bias": jnp.zeros((C,), jnp.float32),
            "heads": heads, "C": C,
            "hsum": hsum, "hexp": hexp, "hmean": hmean,
        })
        in_dim = out_dim

    fc_in = num_gat_nodes[-1]
    for fc_out in num_fc_nodes:
        key, k1, k2 = jax.random.split(key, 3)
        params["fc"].append({
            "W": 0.1 * jax.random.normal(k1, (fc_in, fc_out), jnp.float32),
            "b": 0.1 * jax.random.normal(k2, (fc_out,), jnp.float32),
        })
        fc_in = fc_out

    key, k1, k2 = jax.random.split(key, 3)
    params["pred_W"] = 0.1 * jax.random.normal(k1, (fc_in, num_classes), jnp.float32)
    params["pred_b"] = 0.1 * jax.random.normal(k2, (num_classes,), jnp.float32)
    return params


# ----------------------------------------------------------------------------
# KG_GNN forward (eval mode: dropout = identity; no layer/batch norms;
# concat=False; add_self_loops=False).  ONE pallas_call for the whole forward.
# ----------------------------------------------------------------------------
def kg_gnn_forward(params, x, edge_index, batch_vec, edge_weight, num_graphs):
    src, dst = edge_index[0], edge_index[1]
    N = x.shape[0]
    E = edge_index.shape[1]
    node_ids = jnp.arange(N, dtype=edge_index.dtype)

    # static one-hot gather matrices, built once (glue)
    Gsrc = (src[:, None] == node_ids[None, :]).astype(jnp.float32)   # (E, N)
    Gdst = (dst[:, None] == node_ids[None, :]).astype(jnp.float32)   # (E, N)
    eyeE = jnp.eye(E, dtype=jnp.float32)                             # for lane-dense alpha store
    # TODO(synk): at realistic graph sizes the dense O(E*N) one-hot gather/scatter must be
    # replaced by scalar-prefetched CSR indices (PrefetchScalarGridSpec) with an
    # edge-blocked grid (dimension_semantics=('parallel', ..., 'arbitrary') to use both
    # v7x TensorCores), bf16 MXU operands, and tiles sized to the per-generation scoped
    # VMEM limit (~16 MiB/step on v7x, ~32-48 MiB on v5e/v6e) with pl.when init/finalize.

    # normalized pooling matrix for global_mean_pool (glue, built once)
    gid = jnp.arange(num_graphs, dtype=batch_vec.dtype)
    Pmask = (gid[:, None] == batch_vec[None, :]).astype(jnp.float32)  # (G, N)
    counts = jnp.maximum(jnp.sum(Pmask, axis=1, keepdims=True), 1.0)
    P = Pmask / counts

    ins = [x, edge_weight, Gsrc, Gdst, P, eyeE]
    for layer in params["gat"]:
        ins += [layer["Wl"], layer["bl"].reshape(1, -1),
                layer["Wr"], layer["br"].reshape(1, -1),
                layer["att"], layer["bias"].reshape(1, -1),
                layer["hsum"], layer["hexp"], layer["hmean"]]
    for fcl in params["fc"]:
        ins += [fcl["W"], fcl["b"].reshape(1, -1)]
    ins += [params["pred_W"], params["pred_b"].reshape(1, -1)]

    n_gat = len(params["gat"])
    n_fc = len(params["fc"])
    H = params["gat"][-1]["heads"]
    C_last = params["gat"][-1]["C"]
    ncls = params["pred_W"].shape[1]

    kern = functools.partial(kg_gnn_kernel, n_gat=n_gat, n_fc=n_fc, negative_slope=0.2)
    logits, alpha_t, graph_embedding = pl.pallas_call(
        kern,
        out_shape=(jax.ShapeDtypeStruct((num_graphs, ncls), jnp.float32),
                   jax.ShapeDtypeStruct((H, E), jnp.float32),
                   jax.ShapeDtypeStruct((num_graphs, C_last), jnp.float32)),
        in_specs=[_vmem()] * len(ins),
        out_specs=(_vmem(), _vmem(), _vmem()),
    )(*ins)

    alpha = alpha_t.T                        # back to the PyG (E, H) convention
    attn_scores = (edge_index, alpha)
    return logits, attn_scores, graph_embedding


# ----------------------------------------------------------------------------
if __name__ == "__main__":
    key = jax.random.PRNGKey(0)

    # model config
    input_dim = 8
    num_gat_nodes = [16, 16]
    num_attn_heads = 2
    num_fc_nodes = [32, 16]
    num_classes = 3

    # graph data: 2 graphs x 8 nodes, bidirectional ring edges (no self-loops)
    nodes_per_graph = 8
    num_graphs = 2
    N = num_graphs * nodes_per_graph

    key, kx, kw = jax.random.split(key, 3)
    x = jax.random.normal(kx, (N, input_dim), jnp.float32)

    src_list, dst_list = [], []
    for g in range(num_graphs):
        off = g * nodes_per_graph
        for j in range(nodes_per_graph):
            a, b = off + j, off + (j + 1) % nodes_per_graph
            src_list += [a, b]
            dst_list += [b, a]
    edge_index = jnp.array([src_list, dst_list], dtype=jnp.int32)        # (2, E)
    E = edge_index.shape[1]
    edge_weight = jax.random.uniform(kw, (E, 1), jnp.float32, 0.5, 1.5)  # (E, 1)
    batch_vec = jnp.repeat(jnp.arange(num_graphs, dtype=jnp.int32), nodes_per_graph)

    params = init_params(jax.random.PRNGKey(42), input_dim, num_gat_nodes,
                         num_attn_heads, num_fc_nodes, num_classes)

    logits, attn_scores, graph_embedding = kg_gnn_forward(
        params, x, edge_index, batch_vec, edge_weight, num_graphs)

    jax.block_until_ready(logits)
    jax.block_until_ready(attn_scores[1])
    jax.block_until_ready(graph_embedding)

    assert logits.shape == (num_graphs, num_classes)
    assert attn_scores[1].shape == (E, num_attn_heads)
    assert graph_embedding.shape == (num_graphs, num_gat_nodes[-1])
    assert bool(jnp.all(jnp.isfinite(logits)))
    assert bool(jnp.all(jnp.isfinite(attn_scores[1])))
    assert bool(jnp.all(jnp.isfinite(graph_embedding)))
    # attention weights per destination node sum to ~1 per head (softmax + renorm)
    dst = edge_index[1]
    per_dst = jnp.zeros((N, num_attn_heads), jnp.float32).at[dst].add(attn_scores[1])
    assert bool(jnp.all(jnp.abs(per_dst - 1.0) < 1e-2))
    # TODO(synk): dropout / BatchNorm / LayerNorm / add_self_loops are disabled by the
    # chosen config (eval mode, need_*_norm=False, is_training=False) -> identity.
    print("KERNEL_OK")
</pallas_src>

<mosaic_0001>
module attributes {stable_mosaic.version = 11 : i64} {
  func.func @kg_gnn_kernel(%arg0: memref<16x8xf32, #tpu.memory_space<vmem>>, %arg1: memref<32x1xf32, #tpu.memory_space<vmem>>, %arg2: memref<32x16xf32, #tpu.memory_space<vmem>>, %arg3: memref<32x16xf32, #tpu.memory_space<vmem>>, %arg4: memref<2x16xf32, #tpu.memory_space<vmem>>, %arg5: memref<32x32xf32, #tpu.memory_space<vmem>>, %arg6: memref<8x32xf32, #tpu.memory_space<vmem>>, %arg7: memref<1x32xf32, #tpu.memory_space<vmem>>, %arg8: memref<8x32xf32, #tpu.memory_space<vmem>>, %arg9: memref<1x32xf32, #tpu.memory_space<vmem>>, %arg10: memref<1x32xf32, #tpu.memory_space<vmem>>, %arg11: memref<1x16xf32, #tpu.memory_space<vmem>>, %arg12: memref<32x2xf32, #tpu.memory_space<vmem>>, %arg13: memref<2x32xf32, #tpu.memory_space<vmem>>, %arg14: memref<32x16xf32, #tpu.memory_space<vmem>>, %arg15: memref<16x32xf32, #tpu.memory_space<vmem>>, %arg16: memref<1x32xf32, #tpu.memory_space<vmem>>, %arg17: memref<16x32xf32, #tpu.memory_space<vmem>>, %arg18: memref<1x32xf32, #tpu.memory_space<vmem>>, %arg19: memref<1x32xf32, #tpu.memory_space<vmem>>, %arg20: memref<1x16xf32, #tpu.memory_space<vmem>>, %arg21: memref<32x2xf32, #tpu.memory_space<vmem>>, %arg22: memref<2x32xf32, #tpu.memory_space<vmem>>, %arg23: memref<32x16xf32, #tpu.memory_space<vmem>>, %arg24: memref<16x32xf32, #tpu.memory_space<vmem>>, %arg25: memref<1x32xf32, #tpu.memory_space<vmem>>, %arg26: memref<32x16xf32, #tpu.memory_space<vmem>>, %arg27: memref<1x16xf32, #tpu.memory_space<vmem>>, %arg28: memref<16x3xf32, #tpu.memory_space<vmem>>, %arg29: memref<1x3xf32, #tpu.memory_space<vmem>>, %arg30: memref<2x3xf32, #tpu.memory_space<vmem>>, %arg31: memref<2x32xf32, #tpu.memory_space<vmem>>, %arg32: memref<2x16xf32, #tpu.memory_space<vmem>>) attributes {dimension_semantics = [], scalar_prefetch = 0 : i64, scratch_operands = 0 : i64, tpu.core_type = #tpu.core_type<tc>} {
    %c0 = arith.constant 0 : index
    %c0_0 = arith.constant 0 : index
    %0 = vector.load %arg2[%c0, %c0_0] : memref<32x16xf32, #tpu.memory_space<vmem>>, vector<32x16xf32>
    %c0_1 = arith.constant 0 : index
    %c0_2 = arith.constant 0 : index
    %1 = vector.load %arg3[%c0_1, %c0_2] : memref<32x16xf32, #tpu.memory_space<vmem>>, vector<32x16xf32>
    %c0_3 = arith.constant 0 : index
    %c0_4 = arith.constant 0 : index
    %2 = vector.load %arg1[%c0_3, %c0_4] : memref<32x1xf32, #tpu.memory_space<vmem>>, vector<32x1xf32>
    %c0_5 = arith.constant 0 : index
    %c0_6 = arith.constant 0 : index
    %3 = vector.load %arg0[%c0_5, %c0_6] : memref<16x8xf32, #tpu.memory_space<vmem>>, vector<16x8xf32>
    %c0_7 = arith.constant 0 : index
    %c0_8 = arith.constant 0 : index
    %4 = vector.load %arg6[%c0_7, %c0_8] : memref<8x32xf32, #tpu.memory_space<vmem>>, vector<8x32xf32>
    %cst = arith.constant dense<0.000000e+00> : vector<16x32xf32>
    %5 = tpu.matmul %3, %4, %cst {dimension_numbers = #tpu.dot_dimension_numbers<[1], [0], [0], [1], [0, 0, 1, 1], [], []>} : vector<16x8xf32>, vector<8x32xf32>, vector<16x32xf32> -> vector<16x32xf32>
    %c0_9 = arith.constant 0 : index
    %c0_10 = arith.constant 0 : index
    %6 = vector.load %arg7[%c0_9, %c0_10] : memref<1x32xf32, #tpu.memory_space<vmem>>, vector<1x32xf32>
    %7 = vector.broadcast %6 : vector<1x32xf32> to vector<16x32xf32>
    %8 = arith.addf %5, %7 : vector<16x32xf32>
    %c0_11 = arith.constant 0 : index
    %c0_12 = arith.constant 0 : index
    %9 = vector.load %arg8[%c0_11, %c0_12] : memref<8x32xf32, #tpu.memory_space<vmem>>, vector<8x32xf32>
    %cst_13 = arith.constant dense<0.000000e+00> : vector<16x32xf32>
    %10 = tpu.matmul %3, %9, %cst_13 {dimension_numbers = #tpu.dot_dimension_numbers<[1], [0], [0], [1], [0, 0, 1, 1], [], []>} : vector<16x8xf32>, vector<8x32xf32>, vector<16x32xf32> -> vector<16x32xf32>
    %c0_14 = arith.constant 0 : index
    %c0_15 = arith.constant 0 : index
    %11 = vector.load %arg9[%c0_14, %c0_15] : memref<1x32xf32, #tpu.memory_space<vmem>>, vector<1x32xf32>
    %12 = vector.broadcast %11 : vector<1x32xf32> to vector<16x32xf32>
    %13 = arith.addf %10, %12 : vector<16x32xf32>
    %cst_16 = arith.constant dense<0.000000e+00> : vector<32x32xf32>
    %14 = tpu.matmul %0, %8, %cst_16 {dimension_numbers = #tpu.dot_dimension_numbers<[1], [0], [0], [1], [0, 0, 1, 1], [], []>} : vector<32x16xf32>, vector<16x32xf32>, vector<32x32xf32> -> vector<32x32xf32>
    %cst_17 = arith.constant dense<0.000000e+00> : vector<32x32xf32>
    %15 = tpu.matmul %1, %13, %cst_17 {dimension_numbers = #tpu.dot_dimension_numbers<[1], [0], [0], [1], [0, 0, 1, 1], [], []>} : vector<32x16xf32>, vector<16x32xf32>, vector<32x32xf32> -> vector<32x32xf32>
    %16 = arith.addf %15, %14 : vector<32x32xf32>
    %cst_18 = arith.constant 0.000000e+00 : f32
    %17 = vector.broadcast %cst_18 : f32 to vector<32x32xf32>
    %18 = arith.cmpf oge, %16, %17 : vector<32x32xf32>
    %cst_19 = arith.constant 2.000000e-01 : f32
    %19 = vector.broadcast %cst_19 : f32 to vector<32x32xf32>
    %20 = arith.mulf %19, %16 : vector<32x32xf32>
    %21 = arith.select %18, %16, %20 : vector<32x32xi1>, vector<32x32xf32>
    %c0_20 = arith.constant 0 : index
    %c0_21 = arith.constant 0 : index
    %22 = vector.load %arg10[%c0_20, %c0_21] : memref<1x32xf32, #tpu.memory_space<vmem>>, vector<1x32xf32>
    %23 = vector.broadcast %22 : vector<1x32xf32> to vector<32x32xf32>
    %24 = arith.mulf %21, %23 : vector<32x32xf32>
    %c0_22 = arith.constant 0 : index
    %c0_23 = arith.constant 0 : index
    %25 = vector.load %arg12[%c0_22, %c0_23] : memref<32x2xf32, #tpu.memory_space<vmem>>, vector<32x2xf32>
    %cst_24 = arith.constant dense<0.000000e+00> : vector<32x2xf32>
    %26 = tpu.matmul %24, %25, %cst_24 {dimension_numbers = #tpu.dot_dimension_numbers<[1], [0], [0], [1], [0, 0, 1, 1], [], []>} : vector<32x32xf32>, vector<32x2xf32>, vector<32x2xf32> -> vector<32x2xf32>
    %cst_25 = arith.constant dense<0xFF800000> : vector<2xf32>
    %27 = vector.multi_reduction <maximumf>, %26, %cst_25 [0] : vector<32x2xf32> to vector<2xf32>
    %28 = vector.shape_cast %27 : vector<2xf32> to vector<1x2xf32>
    %29 = vector.broadcast %28 : vector<1x2xf32> to vector<32x2xf32>
    %30 = arith.subf %26, %29 : vector<32x2xf32>
    %31 = math.exp %30 : vector<32x2xf32>
    %32 = vector.broadcast %2 : vector<32x1xf32> to vector<32x2xf32>
    %33 = arith.mulf %31, %32 : vector<32x2xf32>
    %cst_26 = arith.constant dense<0.000000e+00> : vector<16x2xf32>
    %34 = tpu.matmul %1, %33, %cst_26 {dimension_numbers = #tpu.dot_dimension_numbers<[0], [0], [1], [1], [0, 1, 1, 1], [], []>} : vector<32x16xf32>, vector<32x2xf32>, vector<16x2xf32> -> vector<16x2xf32>
    %cst_27 = arith.constant 1.000000e-16 : f32
    %35 = vector.broadcast %cst_27 : f32 to vector<16x2xf32>
    %36 = arith.addf %34, %35 : vector<16x2xf32>
    %37 = tpu.reciprocal %36 {approx = true} : vector<16x2xf32> -> vector<16x2xf32>
    %cst_28 = arith.constant dense<0.000000e+00> : vector<32x2xf32>
    %38 = tpu.matmul %1, %37, %cst_28 {dimension_numbers = #tpu.dot_dimension_numbers<[1], [0], [0], [1], [0, 0, 1, 1], [], []>} : vector<32x16xf32>, vector<16x2xf32>, vector<32x2xf32> -> vector<32x2xf32>
    %39 = arith.mulf %33, %38 : vector<32x2xf32>
    %c0_29 = arith.constant 0 : index
    %c0_30 = arith.constant 0 : index
    %40 = vector.load %arg13[%c0_29, %c0_30] : memref<2x32xf32, #tpu.memory_space<vmem>>, vector<2x32xf32>
    %cst_31 = arith.constant dense<0.000000e+00> : vector<32x32xf32>
    %41 = tpu.matmul %39, %40, %cst_31 {dimension_numbers = #tpu.dot_dimension_numbers<[1], [0], [0], [1], [0, 0, 1, 1], [], []>} : vector<32x2xf32>, vector<2x32xf32>, vector<32x32xf32> -> vector<32x32xf32>
    %42 = arith.mulf %14, %41 : vector<32x32xf32>
    %cst_32 = arith.constant dense<0.000000e+00> : vector<16x32xf32>
    %43 = tpu.matmul %1, %42, %cst_32 {dimension_numbers = #tpu.dot_dimension_numbers<[0], [0], [1], [1], [0, 1, 1, 1], [], []>} : vector<32x16xf32>, vector<32x32xf32>, vector<16x32xf32> -> vector<16x32xf32>
    %c0_33 = arith.constant 0 : index
    %c0_34 = arith.constant 0 : index
    %44 = vector.load %arg14[%c0_33, %c0_34] : memref<32x16xf32, #tpu.memory_space<vmem>>, vector<32x16xf32>
    %cst_35 = arith.constant dense<0.000000e+00> : vector<16x16xf32>
    %45 = tpu.matmul %43, %44, %cst_35 {dimension_numbers = #tpu.dot_dimension_numbers<[1], [0], [0], [1], [0, 0, 1, 1], [], []>} : vector<16x32xf32>, vector<32x16xf32>, vector<16x16xf32> -> vector<16x16xf32>
    %c0_36 = arith.constant 0 : index
    %c0_37 = arith.constant 0 : index
    %46 = vector.load %arg11[%c0_36, %c0_37] : memref<1x16xf32, #tpu.memory_space<vmem>>, vector<1x16xf32>
    %47 = vector.broadcast %46 : vector<1x16xf32> to vector<16x16xf32>
    %48 = arith.addf %45, %47 : vector<16x16xf32>
    %cst_38 = arith.constant 0.000000e+00 : f32
    %49 = vector.broadcast %cst_38 : f32 to vector<16x16xf32>
    %50 = arith.maximumf %48, %49 : vector<16x16xf32>
    %c0_39 = arith.constant 0 : index
    %c0_40 = arith.constant 0 : index
    %51 = vector.load %arg15[%c0_39, %c0_40] : memref<16x32xf32, #tpu.memory_space<vmem>>, vector<16x32xf32>
    %cst_41 = arith.constant dense<0.000000e+00> : vector<16x32xf32>
    %52 = tpu.matmul %50, %51, %cst_41 {dimension_numbers = #tpu.dot_dimension_numbers<[1], [0], [0], [1], [0, 0, 1, 1], [], []>} : vector<16x16xf32>, vector<16x32xf32>, vector<16x32xf32> -> vector<16x32xf32>
    %c0_42 = arith.constant 0 : index
    %c0_43 = arith.constant 0 : index
    %53 = vector.load %arg16[%c0_42, %c0_43] : memref<1x32xf32, #tpu.memory_space<vmem>>, vector<1x32xf32>
    %54 = vector.broadcast %53 : vector<1x32xf32> to vector<16x32xf32>
    %55 = arith.addf %52, %54 : vector<16x32xf32>
    %c0_44 = arith.constant 0 : index
    %c0_45 = arith.constant 0 : index
    %56 = vector.load %arg17[%c0_44, %c0_45] : memref<16x32xf32, #tpu.memory_space<vmem>>, vector<16x32xf32>
    %cst_46 = arith.constant dense<0.000000e+00> : vector<16x32xf32>
    %57 = tpu.matmul %50, %56, %cst_46 {dimension_numbers = #tpu.dot_dimension_numbers<[1], [0], [0], [1], [0, 0, 1, 1], [], []>} : vector<16x16xf32>, vector<16x32xf32>, vector<16x32xf32> -> vector<16x32xf32>
    %c0_47 = arith.constant 0 : index
    %c0_48 = arith.constant 0 : index
    %58 = vector.load %arg18[%c0_47, %c0_48] : memref<1x32xf32, #tpu.memory_space<vmem>>, vector<1x32xf32>
    %59 = vector.broadcast %58 : vector<1x32xf32> to vector<16x32xf32>
    %60 = arith.addf %57, %59 : vector<16x32xf32>
    %cst_49 = arith.constant dense<0.000000e+00> : vector<32x32xf32>
    %61 = tpu.matmul %0, %55, %cst_49 {dimension_numbers = #tpu.dot_dimension_numbers<[1], [0], [0], [1], [0, 0, 1, 1], [], []>} : vector<32x16xf32>, vector<16x32xf32>, vector<32x32xf32> -> vector<32x32xf32>
    %cst_50 = arith.constant dense<0.000000e+00> : vector<32x32xf32>
    %62 = tpu.matmul %1, %60, %cst_50 {dimension_numbers = #tpu.dot_dimension_numbers<[1], [0], [0], [1], [0, 0, 1, 1], [], []>} : vector<32x16xf32>, vector<16x32xf32>, vector<32x32xf32> -> vector<32x32xf32>
    %63 = arith.addf %62, %61 : vector<32x32xf32>
    %cst_51 = arith.constant 0.000000e+00 : f32
    %64 = vector.broadcast %cst_51 : f32 to vector<32x32xf32>
    %65 = arith.cmpf oge, %63, %64 : vector<32x32xf32>
    %cst_52 = arith.constant 2.000000e-01 : f32
    %66 = vector.broadcast %cst_52 : f32 to vector<32x32xf32>
    %67 = arith.mulf %66, %63 : vector<32x32xf32>
    %68 = arith.select %65, %63, %67 : vector<32x32xi1>, vector<32x32xf32>
    %c0_53 = arith.constant 0 : index
    %c0_54 = arith.constant 0 : index
    %69 = vector.load %arg19[%c0_53, %c0_54] : memref<1x32xf32, #tpu.memory_space<vmem>>, vector<1x32xf32>
    %70 = vector.broadcast %69 : vector<1x32xf32> to vector<32x32xf32>
    %71 = arith.mulf %68, %70 : vector<32x32xf32>
    %c0_55 = arith.constant 0 : index
    %c0_56 = arith.constant 0 : index
    %72 = vector.load %arg21[%c0_55, %c0_56] : memref<32x2xf32, #tpu.memory_space<vmem>>, vector<32x2xf32>
    %cst_57 = arith.constant dense<0.000000e+00> : vector<32x2xf32>
    %73 = tpu.matmul %71, %72, %cst_57 {dimension_numbers = #tpu.dot_dimension_numbers<[1], [0], [0], [1], [0, 0, 1, 1], [], []>} : vector<32x32xf32>, vector<32x2xf32>, vector<32x2xf32> -> vector<32x2xf32>
    %cst_58 = arith.constant dense<0xFF800000> : vector<2xf32>
    %74 = vector.multi_reduction <maximumf>, %73, %cst_58 [0] : vector<32x2xf32> to vector<2xf32>
    %75 = vector.shape_cast %74 : vector<2xf32> to vector<1x2xf32>
    %76 = vector.broadcast %75 : vector<1x2xf32> to vector<32x2xf32>
    %77 = arith.subf %73, %76 : vector<32x2xf32>
    %78 = math.exp %77 : vector<32x2xf32>
    %79 = vector.broadcast %2 : vector<32x1xf32> to vector<32x2xf32>
    %80 = arith.mulf %78, %79 : vector<32x2xf32>
    %cst_59 = arith.constant dense<0.000000e+00> : vector<16x2xf32>
    %81 = tpu.matmul %1, %80, %cst_59 {dimension_numbers = #tpu.dot_dimension_numbers<[0], [0], [1], [1], [0, 1, 1, 1], [], []>} : vector<32x16xf32>, vector<32x2xf32>, vector<16x2xf32> -> vector<16x2xf32>
    %cst_60 = arith.constant 1.000000e-16 : f32
    %82 = vector.broadcast %cst_60 : f32 to vector<16x2xf32>
    %83 = arith.addf %81, %82 : vector<16x2xf32>
    %84 = tpu.reciprocal %83 : vector<16x2xf32> -> vector<16x2xf32>
    %cst_61 = arith.constant dense<0.000000e+00> : vector<32x2xf32>
    %85 = tpu.matmul %1, %84, %cst_61 {dimension_numbers = #tpu.dot_dimension_numbers<[1], [0], [0], [1], [0, 0, 1, 1], [], []>} : vector<32x16xf32>, vector<16x2xf32>, vector<32x2xf32> -> vector<32x2xf32>
    %86 = arith.mulf %80, %85 : vector<32x2xf32>
    %c0_62 = arith.constant 0 : index
    %c0_63 = arith.constant 0 : index
    %87 = vector.load %arg5[%c0_62, %c0_63] : memref<32x32xf32, #tpu.memory_space<vmem>>, vector<32x32xf32>
    %cst_64 = arith.constant dense<0.000000e+00> : vector<2x32xf32>
    %88 = tpu.matmul %86, %87, %cst_64 {dimension_numbers = #tpu.dot_dimension_numbers<[0], [0], [1], [1], [0, 1, 1, 1], [], []>} : vector<32x2xf32>, vector<32x32xf32>, vector<2x32xf32> -> vector<2x32xf32>
    %c0_65 = arith.constant 0 : index
    %c0_66 = arith.constant 0 : index
    %89 = vector.load %arg31[%c0_65, %c0_66] : memref<2x32xf32, #tpu.memory_space<vmem>>, vector<2x32xf32>
    tpu.vector_store %arg31[%c0_65, %c0_66], %88 {strides = array<i32>} : memref<2x32xf32, #tpu.memory_space<vmem>>, vector<2x32xf32>,
    %c0_67 = arith.constant 0 : index
    %c0_68 = arith.constant 0 : index
    %90 = vector.load %arg22[%c0_67, %c0_68] : memref<2x32xf32, #tpu.memory_space<vmem>>, vector<2x32xf32>
    %cst_69 = arith.constant dense<0.000000e+00> : vector<32x32xf32>
    %91 = tpu.matmul %86, %90, %cst_69 {dimension_numbers = #tpu.dot_dimension_numbers<[1], [0], [0], [1], [0, 0, 1, 1], [], []>} : vector<32x2xf32>, vector<2x32xf32>, vector<32x32xf32> -> vector<32x32xf32>
    %92 = arith.mulf %61, %91 : vector<32x32xf32>
    %cst_70 = arith.constant dense<0.000000e+00> : vector<16x32xf32>
    %93 = tpu.matmul %1, %92, %cst_70 {dimension_numbers = #tpu.dot_dimension_numbers<[0], [0], [1], [1], [0, 1, 1, 1], [], []>} : vector<32x16xf32>, vector<32x32xf32>, vector<16x32xf32> -> vector<16x32xf32>
    %c0_71 = arith.constant 0 : index
    %c0_72 = arith.constant 0 : index
    %94 = vector.load %arg23[%c0_71, %c0_72] : memref<32x16xf32, #tpu.memory_space<vmem>>, vector<32x16xf32>
    %cst_73 = arith.constant dense<0.000000e+00> : vector<16x16xf32>
    %95 = tpu.matmul %93, %94, %cst_73 {dimension_numbers = #tpu.dot_dimension_numbers<[1], [0], [0], [1], [0, 0, 1, 1], [], []>} : vector<16x32xf32>, vector<32x16xf32>, vector<16x16xf32> -> vector<16x16xf32>
    %c0_74 = arith.constant 0 : index
    %c0_75 = arith.constant 0 : index
    %96 = vector.load %arg20[%c0_74, %c0_75] : memref<1x16xf32, #tpu.memory_space<vmem>>, vector<1x16xf32>
    %97 = vector.broadcast %96 : vector<1x16xf32> to vector<16x16xf32>
    %98 = arith.addf %95, %97 : vector<16x16xf32>
    %c0_76 = arith.constant 0 : index
    %c0_77 = arith.constant 0 : index
    %99 = vector.load %arg4[%c0_76, %c0_77] : memref<2x16xf32, #tpu.memory_space<vmem>>, vector<2x16xf32>
    %cst_78 = arith.constant dense<0.000000e+00> : vector<2x16xf32>
    %100 = tpu.matmul %99, %98, %cst_78 {dimension_numbers = #tpu.dot_dimension_numbers<[1], [0], [0], [1], [0, 0, 1, 1], [], []>} : vector<2x16xf32>, vector<16x16xf32>, vector<2x16xf32> -> vector<2x16xf32>
    %c0_79 = arith.constant 0 : index
    %c0_80 = arith.constant 0 : index
    %101 = vector.load %arg32[%c0_79, %c0_80] : memref<2x16xf32, #tpu.memory_space<vmem>>, vector<2x16xf32>
    tpu.vector_store %arg32[%c0_79, %c0_80], %100 {strides = array<i32>} : memref<2x16xf32, #tpu.memory_space<vmem>>, vector<2x16xf32>,
    %c0_81 = arith.constant 0 : index
    %c0_82 = arith.constant 0 : index
    %102 = vector.load %arg24[%c0_81, %c0_82] : memref<16x32xf32, #tpu.memory_space<vmem>>, vector<16x32xf32>
    %cst_83 = arith.constant dense<0.000000e+00> : vector<2x32xf32>
    %103 = tpu.matmul %100, %102, %cst_83 {dimension_numbers = #tpu.dot_dimension_numbers<[1], [0], [0], [1], [0, 0, 1, 1], [], []>} : vector<2x16xf32>, vector<16x32xf32>, vector<2x32xf32> -> vector<2x32xf32>
    %c0_84 = arith.constant 0 : index
    %c0_85 = arith.constant 0 : index
    %104 = vector.load %arg25[%c0_84, %c0_85] : memref<1x32xf32, #tpu.memory_space<vmem>>, vector<1x32xf32>
    %105 = vector.broadcast %104 : vector<1x32xf32> to vector<2x32xf32>
    %106 = arith.addf %103, %105 : vector<2x32xf32>
    %cst_86 = arith.constant 0.000000e+00 : f32
    %107 = vector.broadcast %cst_86 : f32 to vector<2x32xf32>
    %108 = arith.maximumf %106, %107 : vector<2x32xf32>
    %c0_87 = arith.constant 0 : index
    %c0_88 = arith.constant 0 : index
    %109 = vector.load %arg26[%c0_87, %c0_88] : memref<32x16xf32, #tpu.memory_space<vmem>>, vector<32x16xf32>
    %cst_89 = arith.constant dense<0.000000e+00> : vector<2x16xf32>
    %110 = tpu.matmul %108, %109, %cst_89 {dimension_numbers = #tpu.dot_dimension_numbers<[1], [0], [0], [1], [0, 0, 1, 1], [], []>} : vector<2x32xf32>, vector<32x16xf32>, vector<2x16xf32> -> vector<2x16xf32>
    %c0_90 = arith.constant 0 : index
    %c0_91 = arith.constant 0 : index
    %111 = vector.load %arg27[%c0_90, %c0_91] : memref<1x16xf32, #tpu.memory_space<vmem>>, vector<1x16xf32>
    %112 = vector.broadcast %111 : vector<1x16xf32> to vector<2x16xf32>
    %113 = arith.addf %110, %112 : vector<2x16xf32>
    %c0_92 = arith.constant 0 : index
    %c0_93 = arith.constant 0 : index
    %114 = vector.load %arg28[%c0_92, %c0_93] : memref<16x3xf32, #tpu.memory_space<vmem>>, vector<16x3xf32>
    %cst_94 = arith.constant dense<0.000000e+00> : vector<2x3xf32>
    %115 = tpu.matmul %113, %114, %cst_94 {dimension_numbers = #tpu.dot_dimension_numbers<[1], [0], [0], [1], [0, 0, 1, 1], [], []>} : vector<2x16xf32>, vector<16x3xf32>, vector<2x3xf32> -> vector<2x3xf32>
    %c0_95 = arith.constant 0 : index
    %c0_96 = arith.constant 0 : index
    %116 = vector.load %arg29[%c0_95, %c0_96] : memref<1x3xf32, #tpu.memory_space<vmem>>, vector<1x3xf32>
    %117 = vector.broadcast %116 : vector<1x3xf32> to vector<2x3xf32>
    %118 = arith.addf %115, %117 : vector<2x3xf32>
    %c0_97 = arith.constant 0 : index
    %c0_98 = arith.constant 0 : index
    %119 = vector.load %arg30[%c0_97, %c0_98] : memref<2x3xf32, #tpu.memory_space<vmem>>, vector<2x3xf32>
    tpu.vector_store %arg30[%c0_97, %c0_98], %118 {strides = array<i32>} : memref<2x3xf32, #tpu.memory_space<vmem>>, vector<2x3xf32>,
    return
  }
}

</mosaic_0001>

<bundles_post_ra>
// kernel: tpu_custom_call.1
= control target key start
LH: loop header
LB: loop body
LE: loop exit
PB: predicated region body
PF: predicated region fallthrough
CT: control target
= control target key end

     0   :  { %s3313_s6 = smov 1   ;;  %s3314_s10 = smov 2   ;;  %s3790_s0 = inlined_call_operand.smem [shape: u32[33], index: -1, kind: input, shape index: {}] }
   0x1   :  { %s3360_s5 = sld [smem:[%s3790_s0]]   ;;  %s3315_s14 = smov 3  }
   0x2   :  { %s3365_s9 = sld [smem:[%s3790_s0 + %s3313_s6]]   ;;  %s3316_s18 = smov 4  }
   0x3   :  { %s3370_s13 = sld [smem:[%s3790_s0 + %s3314_s10]]   ;;  %s3317_s22 = smov 5  }
   0x4   :  { %s3375_s17 = sld [smem:[%s3790_s0 + %s3315_s14]]   ;;  %s3318_s26 = smov 6  }
   0x5   :  { %s3380_s21 = sld [smem:[%s3790_s0 + %s3316_s18]]   ;;  %s3319_s30 = smov 7  }
   0x6   :  { %s3385_s25 = sld [smem:[%s3790_s0 + %s3317_s22]]   ;;  %s3320_s4 = smov 8  }
   0x7   :  { %s3390_s29 = sld [smem:[%s3790_s0 + %s3318_s26]]   ;;  %s3321_s10 = smov 9  }
   0x8   :  { %s3395_s3 = sld [smem:[%s3790_s0 + %s3319_s30]]   ;;  %s3322_s15 = smov 10  }
   0x9   :  { %s3400_s8 = sld [smem:[%s3790_s0 + %s3320_s4]]   ;;  %s3323_s20 = smov 11  }
   0xa   :  { %s3405_s14 = sld [smem:[%s3790_s0 + %s3321_s10]]   ;;  %s3324_s26 = smov 12  }
   0xb   :  { %3797 = sst [smem:[#allocation9_spill]] %s3380_s21  ;;  %s3325_s1 = smov 13  }
   0xc   :  { %3798 = sst [smem:[#allocation10_spill]] %s3385_s25  ;;  %s3326_s7 = smov 14  }
   0xd   :  { %s3410_s19 = sld [smem:[%s3790_s0 + %s3322_s15]]   ;;  %s3327_s15 = smov 15  }
   0xe   :  { %s3415_s24 = sld [smem:[%s3790_s0 + %s3323_s20]]   ;;  %s3328_s22 = smov 16  }
   0xf   :  { %s3420_s30 = sld [smem:[%s3790_s0 + %s3324_s26]]   ;;  %s3329_s28 = smov 17  }
  0x10   :  { %s3425_s6 = sld [smem:[%s3790_s0 + %s3325_s1]]  }
  0x11   :  { %s3430_s12 = sld [smem:[%s3790_s0 + %s3326_s7]]   ;;  %s3330_s7 = smov 18  }
  0x12   :  { %s3435_s20 = sld [smem:[%s3790_s0 + %s3327_s15]]   ;;  %s3331_s15 = smov 19  }
  0x13   :  { %s3440_s27 = sld [smem:[%s3790_s0 + %s3328_s22]]   ;;  %s3332_s22 = smov 20  }
  0x14   :  { %3799 = sst [smem:[#allocation11_spill]] %s3415_s24 }
  0x15   :  { %s3445_s4 = sld [smem:[%s3790_s0 + %s3329_s28]]   ;;  %s3333_s28 = smov 21  }
  0x16   :  { %s3450_s21 = sld [smem:[%s3790_s0 + %s3330_s7]]   ;;  %s3334_s7 = smov 22  }
  0x17   :  { %s3455_s25 = sld [smem:[%s3790_s0 + %s3331_s15]]   ;;  %s3335_s15 = smov 23  }
  0x18   :  { %s3465_s24 = sld [smem:[%s3790_s0 + %s3333_s28]]   ;;  %s3337_s28 = smov 25  }
  0x19   :  { %3800 = sst [smem:[#allocation12_spill]] %s3440_s27 }
  0x1a   :  { %s3460_s27 = sld [smem:[%s3790_s0 + %s3332_s22]]   ;;  %s3336_s22 = smov 24  }
  0x1c   :  { %3801 = sst [smem:[#allocation13_spill]] %s3450_s21 }
  0x1d   :  { %3802 = sst [smem:[#allocation14_spill]] %s3455_s25 }
  0x1e   :  { %3804 = sst [smem:[#allocation16_spill]] %s3465_s24 }
  0x1f   :  { %s3470_s21 = sld [smem:[%s3790_s0 + %s3334_s7]]   ;;  %s3338_s7 = smov 26  }
  0x20   :  { %3803 = sst [smem:[#allocation15_spill]] %s3460_s27 }
  0x21   :  { %s3475_s25 = sld [smem:[%s3790_s0 + %s3335_s15]]   ;;  %s3339_s15 = smov 27  }
  0x22   :  { %s3480_s27 = sld [smem:[%s3790_s0 + %s3336_s22]]   ;;  %s3340_s22 = smov 28  }
  0x23   :  { %s3485_s24 = sld [smem:[%s3790_s0 + %s3337_s28]]   ;;  %s3341_s28 = smov 29  }
  0x25   :  { %3805 = sst [smem:[#allocation17_spill]] %s3470_s21 }
  0x26   :  { %s3490_s21 = sld [smem:[%s3790_s0 + %s3338_s7]]   ;;  %s3342_s7 = smov 30  }
  0x27   :  { %3806 = sst [smem:[#allocation18_spill]] %s3475_s25 }
  0x28   :  { %3807 = sst [smem:[#allocation19_spill]] %s3480_s27 }
  0x29   :  { %3808 = sst [smem:[#allocation20_spill]] %s3485_s24 }
  0x2a   :  { %s3495_s25 = sld [smem:[%s3790_s0 + %s3339_s15]]   ;;  %s3343_s15 = smov 31  }
  0x2b   :  { %s3500_s27 = sld [smem:[%s3790_s0 + %s3340_s22]]   ;;  %s3344_s22 = smov 32  }
  0x2c   :  { %3809 = sst [smem:[#allocation21_spill]] %s3490_s21 }
  0x2d   :  { %s3505_s24 = sld [smem:[%s3790_s0 + %s3341_s28]]  }
  0x2e   :  { %s3510_s21 = sld [smem:[%s3790_s0 + %s3342_s7]]  }
  0x30   :  { %3810 = sst [smem:[#allocation22_spill]] %s3495_s25 }
  0x31   :  { %3811 = sst [smem:[#allocation23_spill]] %s3500_s27 }
  0x32   :  { %s3515_s25 = sld [smem:[%s3790_s0 + %s3343_s15]]  }
  0x33   :  { %s3520_s27 = sld [smem:[%s3790_s0 + %s3344_s22]]  }
  0x34   :  { %71 = vsyncpa [#allocation3], 0  ;;  %v147_v0 = vld [vmem:[%s3390_s29] sm:$0xff]  ;;  %vm155_vm0 = vcmask 64512   ;;  %v146_v3 = vld [vmem:[%s3360_s5 + $0x8] sm:$0xff] }
  0x35   :  { %v237_v1 = vld [vmem:[%s3400_s8] sm:$0xff]  ;;  %2824 = vmatprep.subr.mxu0 %v147_v0 }
  0x36   :  { %v145_v2 = vld [vmem:[%s3360_s5] sm:$0xff]  ;;  %2829 = vmatprep.subr.mxu1 %v237_v1 }
  0x37   :  { %72 = vsyncpa [#allocation5], 0  ;;  %2825 = vmatpush3.msra.mxu0 %v147_v0  ;;  %2826 = vmatprep.mubr.msk.f32.mxu0 %vm155_vm0, %v145_v2  ;;  %v3527_v4 = vld [vmem:[%s3370_s13] sm:$0xff]  ;;  %vm320_vm1 = vcmask 130048   ;;  %v3539_v18 = vld [vmem:[%s3370_s13 + $0x8] sm:$0xff]  ;;  %v3345_v32 = vmov 0  }
  0x38   :  { %2830 = vmatpush3.msra.mxu1 %v237_v1  ;;  %2831 = vmatprep.mubr.msk.f32.mxu1 %vm155_vm0, %v145_v2  ;;  %v3530_v5 = vld [vmem:[%s3375_s17] sm:$0xff]  ;;  %v3542_v19 = vld [vmem:[%s3375_s17 + $0x8] sm:$0xff]  ;;  %v3545_v20 = vld [vmem:[%s3370_s13 + $0x10] sm:$0xff]  ;;  %vm542_vm4 = vcmask 261120   ;;  %vm640_vm7 = vcmask 15360   ;;  %vm907_vm8 = vcmask 1041408  }
  0x39   :  { %2827 = vmatmul.mubr.msk.f32.vlgmr.msra.gmra.mrb[0].mxu0 %vm155_vm0, %v146_v3  ;;  %2832 = vmatmul.mubr.msk.f32.vlgmr.msra.gmra.mrb[0].mxu1 %vm155_vm0, %v146_v3  ;;  %v2615_v6 = vld [vmem:[%s3395_s3] ss:$0 sm:$0xff]  ;;  %v3548_v21 = vld [vmem:[%s3375_s17 + $0x10] sm:$0xff]  ;;  %v3559_v22 = vld [vmem:[%s3370_s13 + $0x18] sm:$0xff]  ;;  %s3812_s0 = sld [smem:[#allocation11_spill]]  ;;  %s3813_s5 = sld [smem:[#allocation12_spill]] }
  0x3a   :  { %2838 = vmatprep.mubr.msk.f32.mxu0 %vm320_vm1, %v3527_v4  ;;  %2848 = vmatprep.mubr.msk.f32.mxu1 %vm320_vm1, %v3530_v5  ;;  %v2618_v7 = vld [vmem:[%s3405_s14] ss:$0 sm:$0xff]  ;;  %v3562_v23 = vld [vmem:[%s3375_s17 + $0x18] sm:$0xff]  ;;  %v539_v25 = vld [vmem:[%s3420_s30 + $0x8] sm:$0xff]  ;;  %s3815_s13 = sld [smem:[#allocation16_spill]]  ;;  %s3816_s17 = sld [smem:[#allocation14_spill]] }
  0x3b   :  { %v538_v24 = vld [vmem:[%s3420_s30] sm:$0xff]  ;;  %v540_v27 = vld [vmem:[%s3420_s30 + $0x10] sm:$0xff]  ;;  %v541_v28 = vld [vmem:[%s3420_s30 + $0x18] sm:$0xff]  ;;  %3217 = vset.pattern.permute.xlu0 %v3345_v32  ;;  %3218 = vset.pattern.permute.xlu1 %v3345_v32  ;;  %s3817_s29 = sld [smem:[#allocation10_spill]]  ;;  %s3818_s3 = sld [smem:[#allocation17_spill]]  ;;  %vm3347_vm13 = vmmov 0  }
  0x3c   :  { %v3069_v26 = vpack.c.bf16 %v539_v25, %v538_v24  ;;  %v3073_v29 = vpack.c.bf16 %v541_v28, %v540_v27  ;;  %v141_v30 = vld [vmem:[%s3365_s9] sm:$0xff]  ;;  %v143_v31 = vld [vmem:[%s3365_s9 + $0x10] sm:$0xff]  ;;  %v142_v33 = vld [vmem:[%s3365_s9 + $0x8] sm:$0xff]  ;;  %s3819_s8 = sld [smem:[#allocation18_spill]]  ;;  %vm1941_vm14 = vcmask 254976   ;;  %s3820_s14 = sld [smem:[#allocation15_spill]] }
  0x3d   :  { %668 = vperm.xlu0 %3217, %v141_v30   ;;  %678 = vperm.xlu1 %3218, %v143_v31   ;;  %v144_v34 = vld [vmem:[%s3365_s9 + $0x18] sm:$0xff]  ;;  %v2629_v42 = vld [vmem:[%s3410_s19] ss:$0 sm:$0xff]  ;;  %s3814_s9 = sld [smem:[#allocation13_spill]]  ;;  %s3821_s19 = sld [smem:[#allocation19_spill]]  ;;  %vm2289_vm15 = vcmask 123904  }
  0x3e   :  { %s3822_s30 = sld [smem:[#allocation9_spill]]  ;;  %s3349_s28 = smov [#allocation4]  }
  0x3f   :  { %s2558_s1 = sshll.u32 %s3349_s28, 4  ;;  %s2559_s1 = int_to_ptr.vmem [resolvable:$true] %s2558_s1 }
  0x40   :  { %s3243_s2 = scalar_lea.vmem %s2559_s1, 32  ;;  %p3248_p1 = scmp.lt.s32.totalorder %s2559_s1, %s2559_s1 }
  0x41   :  { %673 = vperm.xlu0 %3217, %v142_v33   ;;  %683 = vperm.xlu1 %3218, %v144_v34   ;;  %p3244_p0 = scmp.ne.s32.totalorder %s2559_s1, %s3243_s2  ;;  %p3249_p2 = scmp.lt.s32.totalorder %s3243_s2, %s3243_s2 }
  0x43   :  { %p3250_p3 = por %p3249_p2, %p3248_p1 }
  0x45   :  { %p3251_p4 = pnand %p3250_p3, %p3244_p0 }
  0x5f   :  { %690 = vxpose.xlu0.b32.start [1/4] (short) (narrow) %v3530_v5, 16 }
  0x63   :  { %691 = vxpose.xlu0.b32.cont [2/4] (short) (narrow) %v3542_v19, 16 }
  0x67   :  { %692 = vxpose.xlu0.b32.cont [3/4] (short) (narrow) %v3548_v21, 16 }
  0x6b   :  { %693 = vxpose.xlu0.b32.end [4/4] (short) (narrow) %v3562_v23, 16 }
  0xbc   :  { %v3597_v60 = vpop.permute.xlu0 %668  ;;  %v3609_v32 = vpop.permute.xlu1 %678 }
  0xc0   :  { %v3599_v61 = vpop.permute.xlu0 %673 }
  0xdf   :  { %v3601_v62 = vpop.trf.xlu0 }
 0x10c   :  { %v2828_v8 = vpop.f32.mrb[0].mxu0  ;;  %v2833_v9 = vpop.f32.mrb[0].mxu1 }
 0x10d   :  { %v234_v10 = vadd.f32 %v2828_v8, %v2615_v6  ;;  %v317_v11 = vadd.f32 %v2833_v9, %v2618_v7  ;;  %v228_v12 = vpop.f32.mrb[1].mxu0  ;;  %v311_v13 = vpop.f32.mrb[1].mxu1 }
 0x10e   :  { %v229_v14 = vadd.f32 %v2615_v6, %v228_v12  ;;  %v312_v15 = vadd.f32 %v2618_v7, %v311_v13 }
 0x110   :  { %v3061_v16 = vpack.c.bf16 %v234_v10, %v229_v14  ;;  %v3065_v17 = vpack.c.bf16 %v317_v11, %v312_v15 }
 0x112   :  { %3062 = vmatprep.subr.bf16.mxu0 %v3061_v16  ;;  %3066 = vmatprep.subr.bf16.mxu1 %v3065_v17 }
 0x113   :  { %3064 = vmatpush3.bf16.msra.mxu0 %v3061_v16  ;;  %3068 = vmatpush3.bf16.msra.mxu1 %v3065_v17 }
 0x114   :  { %3070 = vmatprep.subr.bf16.mxu0 %v3069_v26 }
 0x116   :  { %2839 = vmatmul.mubr.msk.f32.vlgmr.msra.gmra.mrb[2].mxu0 %vm320_vm1, %v3539_v18  ;;  %2849 = vmatmul.mubr.msk.f32.vlgmr.msra.gmra.mrb[2].mxu1 %vm320_vm1, %v3542_v19 }
 0x117   :  { %2841 = vmatprep.mubr.msk.f32.mxu0 %vm320_vm1, %v3545_v20  ;;  %2851 = vmatprep.mubr.msk.f32.mxu1 %vm320_vm1, %v3548_v21 }
 0x118   :  { %3072 = vmatpush3.bf16.msra.mxu0 %v3069_v26 }
 0x119   :  { %3074 = vmatprep.subr.bf16.mxu0 %v3073_v29 }
 0x11a   :  { %2842 = vmatmul.mubr.msk.f32.gmra.mrb[4].mxu0 %vm320_vm1, %v3559_v22  ;;  %2852 = vmatmul.mubr.msk.f32.gmra.mrb[4].mxu1 %vm320_vm1, %v3562_v23 }
 0x11b   :  { %2876 = vmatprep.mubr.msk.f32.mxu1 %vm542_vm4, %v3601_v62 }
 0x11c   :  { %3076 = vmatpush3.bf16.msra.mxu0 %v3073_v29 }
 0x1e9   :  { %v3580_v35 = vpop.f32.mrb[2].mxu0  ;;  %v2850_v36 = vpop.f32.mrb[2].mxu1 }
 0x1ea   :  { %v502_v37 = vadd.f32 %v2850_v36, %v3580_v35  ;;  %v3583_v38 = vpop.f32.mrb[3].mxu0  ;;  %v496_v39 = vpop.f32.mrb[3].mxu1 }
 0x1eb   :  { %v497_v40 = vadd.f32 %v496_v39, %v3583_v38  ;;  %v3611_v36 = vpop.permute.xlu1 %683 }
 0x1ec   :  { %vm516_vm2 = vcmp.ge.f32.partialorder %v502_v37, 0.0  ;;  %v520_v41 = vmul.f32 0.2, %v502_v37 }
 0x1ed   :  { %vm515_vm3 = vcmp.ge.f32.partialorder %v497_v40, 0.0  ;;  %v519_v43 = vmul.f32 0.2, %v497_v40  ;;  %v3587_v44 = vpop.f32.mrb[4].mxu0  ;;  %v2853_v45 = vpop.f32.mrb[4].mxu1 }
 0x1ee   :  { %v524_v46 = vsel %vm516_vm2, %v502_v37, %v520_v41  ;;  %v512_v47 = vadd.f32 %v2853_v45, %v3587_v44  ;;  %v3590_v48 = vpop.f32.mrb[5].mxu0  ;;  %v506_v49 = vpop.f32.mrb[5].mxu1 }
 0x1ef   :  { %v523_v50 = vsel %vm515_vm3, %v497_v40, %v519_v43  ;;  %v507_v51 = vadd.f32 %v506_v49, %v3590_v48  ;;  %v535_v54 = vmul.f32 %v2629_v42, %v524_v46  ;;  %v894_v49 = vld [vmem:[%s3425_s6] sm:$0x3]  ;;  %s3823_s6 = sld [smem:[#allocation21_spill]] }
 0x1f0   :  { %v534_v52 = vmul.f32 %v2629_v42, %v523_v50  ;;  %vm518_vm5 = vcmp.ge.f32.partialorder %v512_v47, 0.0  ;;  %v522_v53 = vmul.f32 0.2, %v512_v47  ;;  %2889 = vmatprep.subr.msk.mxu0 %vm907_vm8, %v894_v49 }
 0x1f1   :  { %vm517_vm6 = vcmp.ge.f32.partialorder %v507_v51, 0.0  ;;  %v521_v55 = vmul.f32 0.2, %v507_v51 }
 0x1f2   :  { %v526_v56 = vsel %vm518_vm5, %v512_v47, %v522_v53  ;;  %2862 = vmatprep.mubr.msk.f32.mxu0 %vm542_vm4, %v534_v52  ;;  %v3617_v47 = vpop.trf.xlu0 }
 0x1f3   :  { %v525_v57 = vsel %vm517_vm6, %v507_v51, %v521_v55  ;;  %2863 = vmatmul.mubr.msk.f32.vlgmr.msra.gmra.mrb[6].mxu0 %vm542_vm4, %v535_v54  ;;  %v537_v59 = vmul.f32 %v2629_v42, %v526_v56 }
 0x1f4   :  { %v536_v58 = vmul.f32 %v2629_v42, %v525_v57  ;;  %2890 = vmatpush3.msk.msra.mxu0 %vm907_vm8, %v894_v49 }
 0x1f6   :  { %2865 = vmatprep.mubr.msk.f32.mxu0 %vm542_vm4, %v536_v58 }
 0x1f7   :  { %2866 = vmatmul.mubr.msk.f32.gmra.mrb[8].mxu0 %vm542_vm4, %v537_v59 }
 0x2c6   :  { %v2864_v63 = vpop.f32.mrb[6].mxu0 }
 0x2c7   :  { %v642_v0 = vsel %vm640_vm7, %v2864_v63, -inf  ;;  %v621_v1 = vpop.f32.mrb[7].mxu0 }
 0x2c8   :  { %v641_v2 = vsel %vm640_vm7, %v621_v1, -inf }
 0x2c9   :  { %v645_v3 = vmax.f32 %v641_v2, %v642_v0 }
 0x2ca   :  { %v2867_v6 = vpop.f32.mrb[8].mxu0 }
 0x2cb   :  { %v644_v7 = vsel %vm640_vm7, %v2867_v6, -inf  ;;  %v631_v8 = vpop.f32.mrb[9].mxu0 }
 0x2cc   :  { %v643_v9 = vsel %vm640_vm7, %v631_v8, -inf }
 0x2cd   :  { %v646_v10 = vmax.f32 %v643_v9, %v644_v7  ;;  %v1076_v7 = vld [vmem:[%s3430_s12 + $0x8] sm:$0xff] }
 0x2cf   :  { %v647_v11 = vmax.f32 %v645_v3, %v646_v10  ;;  %v1078_v10 = vld [vmem:[%s3430_s12 + $0x18] sm:$0xff] }
 0x2d1   :  { %v648_v12 = vrot.slane %v647_v11, 4 }
 0x2d3   :  { %v649_v13 = vmax.f32 %v647_v11, %v648_v12 }
 0x2d5   :  { %v650_v14 = vrot.slane %v649_v13, 2 }
 0x2d7   :  { %v651_v15 = vmax.f32 %v649_v13, %v650_v14 }
 0x2d9   :  { %v652_v16 = vrot.slane %v651_v15, 1 }
 0x2db   :  { %v653_v17 = vmax.f32 %v651_v15, %v652_v16 }
 0x2dd   :  { %v656_v24 = vsub.f32 %v631_v8, %v653_v17  ;;  %v654_v25 = vsub.f32 %v621_v1, %v653_v17  ;;  %v655_v26 = vsub.f32 %v2864_v63, %v653_v17  ;;  %v657_v27 = vsub.f32 %v2867_v6, %v653_v17  ;;  %v1075_v6 = vld [vmem:[%s3430_s12] sm:$0xff]  ;;  %v1077_v8 = vld [vmem:[%s3430_s12 + $0x10] sm:$0xff]  ;;  %s3824_s12 = sld [smem:[#allocation20_spill]] }
 0x2de   :  { %v3097_v9 = vpack.c.bf16 %v1076_v7, %v1075_v6  ;;  %v3101_v11 = vpack.c.bf16 %v1078_v10, %v1077_v8  ;;  %v2664_v8 = vld [vmem:[%s3816_s17] ss:$0 sm:$0xff] }
 0x2df   :  { %v662_v28 = vmul.f32 1.442695, %v656_v24  ;;  %v658_v29 = vmul.f32 1.442695, %v654_v25  ;;  %v660_v30 = vmul.f32 1.442695, %v655_v26 }
 0x2e0   :  { %v664_v31 = vmul.f32 1.442695, %v657_v27  ;;  %3098 = vmatprep.subr.bf16.mxu0 %v3097_v9 }
 0x2e1   :  { %3219 = vpow2.f32 %v662_v28  ;;  %v1170_v28 = vld [vmem:[%s3435_s20 + $0x8] sm:$0xff] }
 0x2e2   :  { %3221 = vpow2.f32 %v658_v29  ;;  %v1259_v29 = vld [vmem:[%s3445_s4] sm:$0xff] }
 0x2e3   :  { %3223 = vpow2.f32 %v660_v30 }
 0x2e4   :  { %3225 = vpow2.f32 %v664_v31 }
 0x2eb   :  { %v3220_v33 = vpop.eup %3219 }
 0x2ec   :  { %v3222_v34 = vpop.eup %3221  ;;  %v688_v42 = vmul.f32 %v3220_v33, %v3609_v32  ;;  %v2647_v33 = vld [vmem:[%s3812_s0] ss:$0 sm:$0xff] }
 0x2ed   :  { %v3224_v37 = vpop.eup %3223  ;;  %v686_v39 = vmul.f32 %v3222_v34, %v3597_v60 }
 0x2ee   :  { %v3226_v40 = vpop.eup %3225  ;;  %v687_v41 = vmul.f32 %v3224_v37, %v3599_v61 }
 0x2ef   :  { %v689_v43 = vmul.f32 %v3226_v40, %v3611_v36 }
 0x2f0   :  { %v3077_v45 = vpack.c.bf16 %v687_v41, %v686_v39 }
 0x2f1   :  { %v3081_v46 = vpack.c.bf16 %v689_v43, %v688_v42 }
 0x2f2   :  { %3078 = vmatprep.subr.bf16.mxu1 %v3077_v45 }
 0x2f3   :  { %3080 = vmatpush3.bf16.msra.mxu1 %v3077_v45  ;;  %v2653_v45 = vld [vmem:[%s3814_s9] ss:$0 sm:$0xff] }
 0x2f4   :  { %3082 = vmatprep.subr.bf16.mxu1 %v3081_v46 }
 0x2f7   :  { %3084 = vmatpush3.bf16.msra.mxu1 %v3081_v46 }
 0x2fa   :  { %2877 = vmatmul.mubr.msk.f32.vlgmr.msra.gmra.mrb[6].mxu1 %vm542_vm4, %v3617_v47 }
 0x2fb   :  { %2883 = vmatprep.mubr.msk.f32.mxu1 %vm320_vm1, %v3530_v5 }
 0x3cd   :  { %v2878_v50 = vpop.f32.mrb[6].mxu1 }
 0x3ce   :  { %v800_v51 = vadd.f32 1e-16, %v2878_v50  ;;  %v794_v52 = vpop.f32.mrb[7].mxu1 }
 0x3cf   :  { %v795_v53 = vadd.f32 1e-16, %v794_v52 }
 0x3d0   :  { %3227 = vrcp.f32 %v800_v51 }
 0x3d1   :  { %3229 = vrcp.f32 %v795_v53 }
 0x3da   :  { %v3228_v54 = vpop.eup %3227 }
 0x3db   :  { %v3230_v55 = vpop.eup %3229 }
 0x3dc   :  { %v3085_v56 = vpack.c.bf16 %v3228_v54, %v3230_v55 }
 0x3de   :  { %3086 = vmatprep.subr.bf16.mxu1 %v3085_v56 }
 0x3df   :  { %3088 = vmatpush3.bf16.msra.mxu1 %v3085_v56 }
 0x3e2   :  { %2884 = vmatmul.mubr.msk.f32.vlgmr.msra.gmra.mrb[8].mxu1 %vm320_vm1, %v3542_v19 }
 0x3e3   :  { %2886 = vmatprep.mubr.msk.f32.mxu1 %vm320_vm1, %v3548_v21 }
 0x3e6   :  { %2887 = vmatmul.mubr.msk.f32.gmra.mrb[10].mxu1 %vm320_vm1, %v3562_v23 }
 0x3e7   :  { %2905 = vmatprep.mubr.msk.f32.mxu1 %vm542_vm4, %v3601_v62 }
 0x4b5   :  { %v2885_v57 = vpop.f32.mrb[8].mxu1 }
 0x4b6   :  { %v871_v58 = vpop.f32.mrb[9].mxu1  ;;  %v891_v63 = vmul.f32 %v2885_v57, %v687_v41 }
 0x4b7   :  { %v890_v59 = vmul.f32 %v871_v58, %v686_v39 }
 0x4b9   :  { %v2888_v0 = vpop.f32.mrb[10].mxu1  ;;  %2891 = vmatprep.mubr.msk.f32.mxu0 %vm640_vm7, %v890_v59  ;;  %v1538_v59 = vld [vmem:[%s3815_s13 + $0x10] sm:$0xff] }
 0x4ba   :  { %v881_v1 = vpop.f32.mrb[11].mxu1  ;;  %2892 = vmatmul.mubr.msk.f32.vlgmr.msra.gmra.mrb[10].mxu0 %vm640_vm7, %v891_v63  ;;  %v893_v3 = vmul.f32 %v2888_v0, %v689_v43  ;;  %v2650_v43 = vld [vmem:[%s3813_s5] ss:$0 sm:$0xff] }
 0x4bb   :  { %v892_v2 = vmul.f32 %v881_v1, %v688_v42  ;;  %3100 = vmatpush3.bf16.msra.mxu0 %v3097_v9 }
 0x4bc   :  { %3102 = vmatprep.subr.bf16.mxu0 %v3101_v11 }
 0x4bd   :  { %2894 = vmatprep.mubr.msk.f32.mxu0 %vm640_vm7, %v892_v2 }
 0x4be   :  { %2895 = vmatmul.mubr.msk.f32.gmra.mrb[12].mxu0 %vm640_vm7, %v893_v3 }
 0x4bf   :  { %3104 = vmatpush3.bf16.msra.mxu0 %v3101_v11 }
 0x58d   :  { %v2893_v12 = vpop.f32.mrb[10].mxu0 }
 0x58e   :  { %v997_v13 = vmul.f32 %v2893_v12, %v3580_v35  ;;  %v977_v14 = vpop.f32.mrb[11].mxu0 }
 0x58f   :  { %v996_v15 = vmul.f32 %v977_v14, %v3583_v38 }
 0x591   :  { %v3089_v16 = vpack.c.bf16 %v997_v13, %v996_v15  ;;  %v2896_v17 = vpop.f32.mrb[12].mxu0 }
 0x592   :  { %v999_v24 = vmul.f32 %v2896_v17, %v3587_v44  ;;  %v987_v25 = vpop.f32.mrb[13].mxu0  ;;  %v1169_v44 = vld [vmem:[%s3435_s20] sm:$0xff]  ;;  %s3825_s20 = sld [smem:[#allocation23_spill]] }
 0x593   :  { %v998_v26 = vmul.f32 %v987_v25, %v3590_v48  ;;  %3090 = vmatprep.subr.bf16.mxu1 %v3089_v16  ;;  %v3105_v30 = vpack.c.bf16 %v1170_v28, %v1169_v44  ;;  %v1260_v48 = vld [vmem:[%s3445_s4 + $0x8] sm:$0xff]  ;;  %s3826_s4 = sld [smem:[#allocation22_spill]] }
 0x594   :  { %3092 = vmatpush3.bf16.msra.mxu1 %v3089_v16  ;;  %v3109_v31 = vpack.c.bf16 %v1260_v48, %v1259_v29 }
 0x595   :  { %v3093_v27 = vpack.c.bf16 %v999_v24, %v998_v26 }
 0x596   :  { %3110 = vmatprep.subr.bf16.mxu0 %v3109_v31 }
 0x597   :  { %3094 = vmatprep.subr.bf16.mxu1 %v3093_v27 }
 0x598   :  { %3096 = vmatpush3.bf16.msra.mxu1 %v3093_v27 }
 0x599   :  { %3106 = vmatprep.subr.bf16.mxu1 %v3105_v30 }
 0x59b   :  { %2906 = vmatmul.mubr.msk.f32.vlgmr.msra.gmra.mrb[12].mxu1 %vm542_vm4, %v3617_v47 }
 0x59c   :  { %3108 = vmatpush3.bf16.msra.mxu1 %v3105_v30 }
 0x66e   :  { %v2907_v35 = vpop.f32.mrb[12].mxu1 }
 0x66f   :  { %v1066_v38 = vpop.f32.mrb[13].mxu1 }
 0x670   :  { %2916 = vmatprep.mubr.msk.f32.mxu0 %vm542_vm4, %v1066_v38 }
 0x671   :  { %2917 = vmatmul.mubr.msk.f32.vlgmr.msra.gmra.mrb[14].mxu0 %vm542_vm4, %v2907_v35 }
 0x672   :  { %3112 = vmatpush3.bf16.msra.mxu0 %v3109_v31 }
 0x744   :  { %v2918_v34 = vpop.f32.mrb[14].mxu0 }
 0x745   :  { %v1164_v37 = vadd.f32 %v2918_v34, %v2647_v33  ;;  %v1158_v39 = vpop.f32.mrb[15].mxu0 }
 0x746   :  { %v1159_v40 = vadd.f32 %v2647_v33, %v1158_v39 }
 0x747   :  { %v1168_v42 = vmax.f32 %v1164_v37, 0.0 }
 0x748   :  { %v1167_v41 = vmax.f32 %v1159_v40, 0.0 }
 0x74a   :  { %2923 = vmatprep.mubr.msk.f32.mxu1 %vm320_vm1, %v1167_v41  ;;  %2930 = vmatprep.mubr.msk.f32.mxu0 %vm320_vm1, %v1167_v41 }
 0x74b   :  { %2924 = vmatmul.mubr.msk.f32.vlgmr.msra.gmra.mrb[14].mxu1 %vm320_vm1, %v1168_v42  ;;  %2931 = vmatmul.mubr.msk.f32.vlgmr.msra.gmra.mrb[16].mxu0 %vm320_vm1, %v1168_v42 }
 0x74c   :  { %2937 = vmatprep.mubr.msk.f32.mxu1 %vm320_vm1, %v3527_v4  ;;  %2947 = vmatprep.mubr.msk.f32.mxu0 %vm320_vm1, %v3530_v5  ;;  %v1536_v4 = vld [vmem:[%s3815_s13] sm:$0xff] }
 0x81e   :  { %v2925_v46 = vpop.f32.mrb[14].mxu1  ;;  %v2932_v49 = vpop.f32.mrb[16].mxu0 }
 0x81f   :  { %v1256_v50 = vadd.f32 %v2925_v46, %v2650_v43  ;;  %v1340_v51 = vadd.f32 %v2932_v49, %v2653_v45  ;;  %v1250_v52 = vpop.f32.mrb[15].mxu1  ;;  %v1334_v53 = vpop.f32.mrb[17].mxu0 }
 0x820   :  { %v1251_v54 = vadd.f32 %v2650_v43, %v1250_v52  ;;  %v1335_v55 = vadd.f32 %v2653_v45, %v1334_v53 }
 0x822   :  { %v3113_v56 = vpack.c.bf16 %v1256_v50, %v1251_v54  ;;  %v3117_v57 = vpack.c.bf16 %v1340_v51, %v1335_v55 }
 0x824   :  { %3114 = vmatprep.subr.bf16.mxu1 %v3113_v56  ;;  %3118 = vmatprep.subr.bf16.mxu0 %v3117_v57 }
 0x825   :  { %3116 = vmatpush3.bf16.msra.mxu1 %v3113_v56  ;;  %3120 = vmatpush3.bf16.msra.mxu0 %v3117_v57 }
 0x828   :  { %2938 = vmatmul.mubr.msk.f32.vlgmr.msra.gmra.mrb[16].mxu1 %vm320_vm1, %v3539_v18  ;;  %2948 = vmatmul.mubr.msk.f32.vlgmr.msra.gmra.mrb[18].mxu0 %vm320_vm1, %v3542_v19  ;;  %v1537_v18 = vld [vmem:[%s3815_s13 + $0x8] sm:$0xff] }
 0x829   :  { %2940 = vmatprep.mubr.msk.f32.mxu1 %vm320_vm1, %v3545_v20  ;;  %2950 = vmatprep.mubr.msk.f32.mxu0 %vm320_vm1, %v3548_v21  ;;  %v3121_v58 = vpack.c.bf16 %v1537_v18, %v1536_v4  ;;  %v1539_v20 = vld [vmem:[%s3815_s13 + $0x18] sm:$0xff] }
 0x82a   :  { %v3125_v63 = vpack.c.bf16 %v1539_v20, %v1538_v59 }
 0x82b   :  { %3122 = vmatprep.subr.bf16.mxu1 %v3121_v58 }
 0x82c   :  { %2941 = vmatmul.mubr.msk.f32.gmra.mrb[18].mxu1 %vm320_vm1, %v3559_v22  ;;  %2951 = vmatmul.mubr.msk.f32.gmra.mrb[20].mxu0 %vm320_vm1, %v3562_v23 }
 0x82d   :  { %2975 = vmatprep.mubr.msk.f32.mxu0 %vm542_vm4, %v3601_v62  ;;  %3124 = vmatpush3.bf16.msra.mxu1 %v3121_v58 }
 0x82e   :  { %3126 = vmatprep.subr.bf16.mxu1 %v3125_v63 }
 0x831   :  { %3128 = vmatpush3.bf16.msra.mxu1 %v3125_v63 }
 0x8fb   :  { %v3683_v0 = vpop.f32.mrb[16].mxu1  ;;  %v2949_v22 = vpop.f32.mrb[18].mxu0 }
 0x8fc   :  { %v1500_v1 = vadd.f32 %v2949_v22, %v3683_v0  ;;  %v3686_v2 = vpop.f32.mrb[17].mxu1  ;;  %v1494_v3 = vpop.f32.mrb[19].mxu0 }
 0x8fd   :  { %v1495_v6 = vadd.f32 %v1494_v3, %v3686_v2 }
 0x8fe   :  { %vm1514_vm9 = vcmp.ge.f32.partialorder %v1500_v1, 0.0  ;;  %v1518_v7 = vmul.f32 0.2, %v1500_v1 }
 0x8ff   :  { %vm1513_vm10 = vcmp.ge.f32.partialorder %v1495_v6, 0.0  ;;  %v1517_v9 = vmul.f32 0.2, %v1495_v6  ;;  %v3690_v10 = vpop.f32.mrb[18].mxu1  ;;  %v2952_v11 = vpop.f32.mrb[20].mxu0 }
 0x900   :  { %v1522_v12 = vsel %vm1514_vm9, %v1500_v1, %v1518_v7  ;;  %v1510_v13 = vadd.f32 %v2952_v11, %v3690_v10  ;;  %v3693_v14 = vpop.f32.mrb[19].mxu1  ;;  %v1504_v15 = vpop.f32.mrb[21].mxu0 }
 0x901   :  { %v1521_v16 = vsel %vm1513_vm10, %v1495_v6, %v1517_v9  ;;  %v1505_v17 = vadd.f32 %v1504_v15, %v3693_v14  ;;  %v1533_v26 = vmul.f32 %v2664_v8, %v1522_v12  ;;  %v1834_v15 = vld [vmem:[%s3817_s29 + $0x10] sm:$0xff] }
 0x902   :  { %v1532_v24 = vmul.f32 %v2664_v8, %v1521_v16  ;;  %vm1516_vm11 = vcmp.ge.f32.partialorder %v1510_v13, 0.0  ;;  %v1520_v25 = vmul.f32 0.2, %v1510_v13  ;;  %v3346_v16 = vmov 0.0|0.0  }
 0x903   :  { %vm1515_vm12 = vcmp.ge.f32.partialorder %v1505_v17, 0.0  ;;  %v1519_v27 = vmul.f32 0.2, %v1505_v17  ;;  %3141 = vmatprep.subr.bf16.mxu1 %v3346_v16 }
 0x904   :  { %v1524_v35 = vsel %vm1516_vm11, %v1510_v13, %v1520_v25  ;;  %2961 = vmatprep.mubr.msk.f32.mxu1 %vm542_vm4, %v1532_v24  ;;  %v1833_v13 = vld [vmem:[%s3817_s29 + $0x8] sm:$0xff]  ;;  %v1835_v24 = vld [vmem:[%s3817_s29 + $0x18] sm:$0xff] }
 0x905   :  { %v1523_v38 = vsel %vm1515_vm12, %v1505_v17, %v1519_v27  ;;  %2962 = vmatmul.mubr.msk.f32.vlgmr.msra.gmra.mrb[20].mxu1 %vm542_vm4, %v1533_v26  ;;  %v1535_v28 = vmul.f32 %v2664_v8, %v1524_v35  ;;  %v1943_v35 = vld [vmem:[%s3818_s3] sm:$0x3] }
 0x906   :  { %v1534_v44 = vmul.f32 %v2664_v8, %v1523_v38 }
 0x908   :  { %2964 = vmatprep.mubr.msk.f32.mxu1 %vm542_vm4, %v1534_v44 }
 0x909   :  { %2965 = vmatmul.mubr.msk.f32.gmra.mrb[22].mxu1 %vm542_vm4, %v1535_v28 }
 0x9d8   :  { %v2963_v29 = vpop.f32.mrb[20].mxu1 }
 0x9d9   :  { %v1638_v30 = vsel %vm640_vm7, %v2963_v29, -inf  ;;  %v1618_v48 = vpop.f32.mrb[21].mxu1 }
 0x9da   :  { %v1637_v31 = vsel %vm640_vm7, %v1618_v48, -inf }
 0x9db   :  { %v1641_v33 = vmax.f32 %v1637_v31, %v1638_v30  ;;  %v2123_v30 = vld [vmem:[%s3819_s8] sm:$0xff]  ;;  %v2125_v31 = vld [vmem:[%s3819_s8 + $0x10] sm:$0xff] }
 0x9dc   :  { %v2966_v34 = vpop.f32.mrb[22].mxu1 }
 0x9dd   :  { %v1640_v37 = vsel %vm640_vm7, %v2966_v34, -inf  ;;  %v1628_v39 = vpop.f32.mrb[23].mxu1 }
 0x9de   :  { %v1639_v40 = vsel %vm640_vm7, %v1628_v39, -inf }
 0x9df   :  { %v1642_v41 = vmax.f32 %v1639_v40, %v1640_v37 }
 0x9e1   :  { %v1643_v42 = vmax.f32 %v1641_v33, %v1642_v41 }
 0x9e3   :  { %v1644_v43 = vrot.slane %v1643_v42, 4 }
 0x9e5   :  { %v1645_v45 = vmax.f32 %v1643_v42, %v1644_v43 }
 0x9e7   :  { %v1646_v46 = vrot.slane %v1645_v45, 2 }
 0x9e9   :  { %v1647_v49 = vmax.f32 %v1645_v45, %v1646_v46 }
 0x9eb   :  { %v1648_v50 = vrot.slane %v1647_v49, 1 }
 0x9ed   :  { %v1649_v51 = vmax.f32 %v1647_v49, %v1648_v50 }
 0x9ef   :  { %v1650_v52 = vsub.f32 %v1618_v48, %v1649_v51  ;;  %v1651_v53 = vsub.f32 %v2963_v29, %v1649_v51  ;;  %v1652_v54 = vsub.f32 %v1628_v39, %v1649_v51  ;;  %v1653_v55 = vsub.f32 %v2966_v34, %v1649_v51  ;;  %v2124_v48 = vld [vmem:[%s3819_s8 + $0x8] sm:$0xff]  ;;  %v2126_v34 = vld [vmem:[%s3819_s8 + $0x18] sm:$0xff] }
 0x9f0   :  { %v3155_v33 = vpack.c.bf16 %v2124_v48, %v2123_v30  ;;  %v3159_v37 = vpack.c.bf16 %v2126_v34, %v2125_v31 }
 0x9f1   :  { %v1658_v56 = vmul.f32 1.442695, %v1652_v54  ;;  %v1654_v57 = vmul.f32 1.442695, %v1650_v52  ;;  %v1656_v4 = vmul.f32 1.442695, %v1651_v53 }
 0x9f2   :  { %v1660_v18 = vmul.f32 1.442695, %v1653_v55 }
 0x9f3   :  { %3231 = vpow2.f32 %v1658_v56  ;;  %v2291_v56 = vld [vmem:[%s3821_s19] sm:$0xff] }
 0x9f4   :  { %3233 = vpow2.f32 %v1654_v57  ;;  %v2292_v57 = vld [vmem:[%s3821_s19 + $0x8] sm:$0xff] }
 0x9f5   :  { %3235 = vpow2.f32 %v1656_v4 }
 0x9f6   :  { %3237 = vpow2.f32 %v1660_v18  ;;  %v2215_v18 = vld [vmem:[%s3822_s30] sm:$0x3] }
 0x9fd   :  { %v3232_v58 = vpop.eup %3231 }
 0x9fe   :  { %v3234_v59 = vpop.eup %3233  ;;  %v1664_v3 = vmul.f32 %v3232_v58, %v3609_v32  ;;  %v3167_v58 = vpack.c.bf16 %v2292_v57, %v2291_v56 }
 0x9ff   :  { %v3236_v20 = vpop.eup %3235  ;;  %v1662_v63 = vmul.f32 %v3234_v59, %v3597_v60  ;;  %v2374_v59 = vld [vmem:[%s3823_s6] sm:$0xff] }
 0xa00   :  { %v3238_v22 = vpop.eup %3237  ;;  %v1663_v1 = vmul.f32 %v3236_v20, %v3599_v61  ;;  %v2375_v20 = vld [vmem:[%s3823_s6 + $0x8] sm:$0xff] }
 0xa01   :  { %v1665_v6 = vmul.f32 %v3238_v22, %v3611_v36 }
 0xa02   :  { %v3129_v7 = vpack.c.bf16 %v1663_v1, %v1662_v63 }
 0xa03   :  { %v3133_v8 = vpack.c.bf16 %v1665_v6, %v1664_v3 }
 0xa04   :  { %3130 = vmatprep.subr.bf16.mxu0 %v3129_v7 }
 0xa05   :  { %3132 = vmatpush3.bf16.msra.mxu0 %v3129_v7 }
 0xa06   :  { %3134 = vmatprep.subr.bf16.mxu0 %v3133_v8 }
 0xa09   :  { %3136 = vmatpush3.bf16.msra.mxu0 %v3133_v8  ;;  %v2687_v8 = vld [vmem:[%s3824_s12] ss:$0 sm:$0xff] }
 0xa0c   :  { %2976 = vmatmul.mubr.msk.f32.vlgmr.msra.gmra.mrb[22].mxu0 %vm542_vm4, %v3617_v47 }
 0xa0d   :  { %2982 = vmatprep.mubr.msk.f32.mxu0 %vm320_vm1, %v3530_v5  ;;  %v1832_v5 = vld [vmem:[%s3817_s29] sm:$0xff] }
 0xa0e   :  { %v3142_v17 = vpack.c.bf16 %v1833_v13, %v1832_v5  ;;  %v2689_v5 = vld [vmem:[%s3826_s4] ss:$0 sm:$0xff] }
 0xa10   :  { %3143 = vmatpush3.bf16.msra.mxu1 %v3142_v17 }
 0xa11   :  { %3144 = vmatprep.subr.bf16.mxu1 %v3346_v16 }
 0xadf   :  { %v2977_v60 = vpop.f32.mrb[22].mxu0 }
 0xae0   :  { %v1738_v61 = vadd.f32 1e-16, %v2977_v60  ;;  %v1732_v32 = vpop.f32.mrb[23].mxu0 }
 0xae1   :  { %v1733_v9 = vadd.f32 1e-16, %v1732_v32 }
 0xae2   :  { %3239 = vrcp.f32 %v1738_v61 }
 0xae3   :  { %3241 = vrcp.f32 %v1733_v9 }
 0xaec   :  { %v3240_v36 = vpop.eup %3239 }
 0xaed   :  { %v3242_v11 = vpop.eup %3241 }
 0xaee   :  { %v3137_v12 = vpack.c.bf16 %v3240_v36, %v3242_v11  ;;  %v2458_v36 = vld [vmem:[%s3825_s20] sm:$0xff]  ;;  %v2459_v11 = vld [vmem:[%s3825_s20 + $0x8] sm:$0xff] }
 0xaf0   :  { %3138 = vmatprep.subr.bf16.mxu0 %v3137_v12 }
 0xaf1   :  { %3140 = vmatpush3.bf16.msra.mxu0 %v3137_v12  ;;  %v3176_v12 = vpack.c.bf16 %v2459_v11, %v2458_v36 }
 0xaf4   :  { %2983 = vmatmul.mubr.msk.f32.vlgmr.msra.gmra.mrb[24].mxu0 %vm320_vm1, %v3542_v19  ;;  %v3348_v19 = vmov 0.0  }
 0xaf5   :  { %2985 = vmatprep.mubr.msk.f32.mxu0 %vm320_vm1, %v3548_v21  ;;  %2996 = vmatprep.mubr.msk.f32.mxu1 %vm3347_vm13, %v3348_v19  ;;  %v3145_v21 = vpack.c.bf16 %v1835_v24, %v1834_v15 }
 0xaf7   :  { %3146 = vmatpush3.bf16.msra.mxu1 %v3145_v21 }
 0xaf8   :  { %2986 = vmatmul.mubr.msk.f32.gmra.mrb[26].mxu0 %vm320_vm1, %v3562_v23  ;;  %2999 = vmatprep.subr.msk.mxu1 %vm907_vm8, %v1943_v35 }
 0xaf9   :  { %3015 = vmatprep.mubr.msk.f32.mxu0 %vm542_vm4, %v3601_v62 }
 0xbc7   :  { %v2984_v23 = vpop.f32.mrb[24].mxu0 }
 0xbc8   :  { %v1809_v62 = vpop.f32.mrb[25].mxu0  ;;  %v1829_v38 = vmul.f32 %v2984_v23, %v1663_v1 }
 0xbc9   :  { %v1828_v25 = vmul.f32 %v1809_v62, %v1662_v63  ;;  %v3170_v63 = vpack.c.bf16 %v2375_v20, %v2374_v59 }
 0xbcb   :  { %1836 = vxpose.xlu1.b32.start [1/4] (short) (narrow) %v1828_v25, 8  ;;  %v2987_v26 = vpop.f32.mrb[26].mxu0 }
 0xbcc   :  { %v1819_v27 = vpop.f32.mrb[27].mxu0  ;;  %v1831_v28 = vmul.f32 %v2987_v26, %v1665_v6  ;;  %v2377_v6 = vld [vmem:[%s3823_s6 + $0x18] sm:$0xff] }
 0xbcd   :  { %v1830_v44 = vmul.f32 %v1819_v27, %v1664_v3  ;;  %v2376_v3 = vld [vmem:[%s3823_s6 + $0x10] sm:$0xff] }
 0xbce   :  { %v3173_v7 = vpack.c.bf16 %v2377_v6, %v2376_v3 }
 0xbcf   :  { %1837 = vxpose.xlu1.b32.cont [2/4] (short) (narrow) %v1829_v38, 8 }
 0xbd3   :  { %1838 = vxpose.xlu1.b32.cont [3/4] (short) (narrow) %v1830_v44, 8 }
 0xbd7   :  { %1839 = vxpose.xlu1.b32.end [4/4] (short) (narrow) %v1831_v28, 8 }
 0xc4b   :  { %v1852_v29 = vpop.trf.xlu1 }
 0xc4c   :  { %2997 = vmatmul.mubr.msk.f32.vlgmr.msra.gmra.mrb[24].mxu1 %vm542_vm4, %v1852_v29 }
 0xc4d   :  { %3000 = vmatpush3.msk.msra.mxu1 %vm907_vm8, %v1943_v35  ;;  %3001 = vmatprep.mubr.msk.f32.mxu1 %vm640_vm7, %v1828_v25 }
 0xc4e   :  { %3156 = vmatprep.subr.bf16.mxu1 %v3155_v33 }
 0xc50   :  { %3002 = vmatmul.mubr.msk.f32.vlgmr.msra.gmra.mrb[26].mxu1 %vm640_vm7, %v1829_v38 }
 0xc51   :  { %3004 = vmatprep.mubr.msk.f32.mxu1 %vm640_vm7, %v1830_v44  ;;  %3158 = vmatpush3.bf16.msra.mxu1 %v3155_v33 }
 0xc52   :  { %3160 = vmatprep.subr.bf16.mxu1 %v3159_v37 }
 0xc54   :  { %3005 = vmatmul.mubr.msk.f32.gmra.mrb[28].mxu1 %vm640_vm7, %v1831_v28 }
 0xc55   :  { %3162 = vmatpush3.bf16.msra.mxu1 %v3159_v37 }
 0xc56   :  { %3169 = vmatprep.subr.bf16.mxu1 %v3346_v16 }
 0xd1f   :  { %v1937_v39 = vpop.f32.mrb[24].mxu1 }
 0xd20   :  { %1942 = vst.msk [vmem:[#allocation4] sm:$0x3] %vm1941_vm14, %v1937_v39  ;;  %v2998_v40 = vpop.f32.mrb[25].mxu1 }
 0xd23   :  { %v3003_v41 = vpop.f32.mrb[26].mxu1 }
 0xd24   :  { %v2045_v42 = vmul.f32 %v3003_v41, %v3683_v0  ;;  %v2025_v43 = vpop.f32.mrb[27].mxu1 }
 0xd25   :  { %v2044_v45 = vmul.f32 %v2025_v43, %v3686_v2 }
 0xd27   :  { %v3147_v46 = vpack.c.bf16 %v2045_v42, %v2044_v45  ;;  %v3006_v49 = vpop.f32.mrb[28].mxu1 }
 0xd28   :  { %v2047_v50 = vmul.f32 %v3006_v49, %v3690_v10  ;;  %v2035_v51 = vpop.f32.mrb[29].mxu1  ;;  %v2683_v10 = vld [vmem:[%s3820_s14] ss:$0 sm:$0xff] }
 0xd29   :  { %v2046_v52 = vmul.f32 %v2035_v51, %v3693_v14  ;;  %3148 = vmatprep.subr.bf16.mxu0 %v3147_v46 }
 0xd2a   :  { %3150 = vmatpush3.bf16.msra.mxu0 %v3147_v46 }
 0xd2b   :  { %v3151_v53 = vpack.c.bf16 %v2047_v50, %v2046_v52 }
 0xd2d   :  { %3152 = vmatprep.subr.bf16.mxu0 %v3151_v53 }
 0xd2e   :  { %3154 = vmatpush3.bf16.msra.mxu0 %v3151_v53 }
 0xd2f   :  { %3163 = vmatprep.subr.bf16.mxu0 %v3346_v16 }
 0xd31   :  { %3016 = vmatmul.mubr.msk.f32.vlgmr.msra.gmra.mrb[28].mxu0 %vm542_vm4, %v3617_v47 }
 0xd32   :  { %3033 = vmatprep.mubr.msk.f32.mxu0 %vm3347_vm13, %v3348_v19 }
 0xe04   :  { %v3017_v0 = vpop.f32.mrb[28].mxu0 }
 0xe05   :  { %v2114_v2 = vpop.f32.mrb[29].mxu0 }
 0xe06   :  { %3026 = vmatprep.mubr.msk.f32.mxu1 %vm542_vm4, %v2114_v2 }
 0xe07   :  { %3027 = vmatmul.mubr.msk.f32.vlgmr.msra.gmra.mrb[30].mxu1 %vm542_vm4, %v3017_v0 }
 0xe08   :  { %3051 = vmatprep.mubr.msk.f32.mxu1 %vm3347_vm13, %v3348_v19  ;;  %3171 = vmatpush3.bf16.msra.mxu1 %v3170_v63 }
 0xe09   :  { %3172 = vmatprep.subr.bf16.mxu1 %v3346_v16 }
 0xe0c   :  { %3174 = vmatpush3.bf16.msra.mxu1 %v3173_v7 }
 0xeda   :  { %v3028_v14 = vpop.f32.mrb[30].mxu1 }
 0xedb   :  { %v2212_v54 = vadd.f32 %v3028_v14, %v2683_v10  ;;  %v2206_v55 = vpop.f32.mrb[31].mxu1 }
 0xedc   :  { %v2207_v47 = vadd.f32 %v2683_v10, %v2206_v55 }
 0xede   :  { %v3164_v4 = vpack.c.bf16 %v2212_v54, %v2207_v47 }
 0xee0   :  { %3165 = vmatpush3.bf16.msra.mxu0 %v3164_v4 }
 0xee1   :  { %3166 = vmatprep.subr.bf16.mxu0 %v3346_v16 }
 0xee3   :  { %3034 = vmatmul.mubr.msk.f32.vlgmr.msra.gmra.mrb[30].mxu0 %vm320_vm1, %v2215_v18 }
 0xee4   :  { %3168 = vmatpush3.bf16.msra.mxu0 %v3167_v58  ;;  %3040 = vmatprep.mubr.msk.f32.mxu0 %vm3347_vm13, %v3348_v19 }
 0xee5   :  { %3175 = vmatprep.subr.bf16.mxu0 %v3346_v16 }
 0xfb6   :  { %v2285_v22 = vpop.f32.mrb[30].mxu0 }
 0xfb7   :  { %v3035_v1 = vpop.f32.mrb[31].mxu0  ;;  %3041 = vmatmul.mubr.msk.f32.vlgmr.msra.gmra.mrb[32].mxu0 %vm320_vm1, %v2285_v22  ;;  %2290 = vst.msk [vmem:[#allocation6] sm:$0x3] %vm2289_vm15, %v2285_v22 }
 0xfb8   :  { %3058 = vmatprep.mubr.msk.f32.mxu0 %vm3347_vm13, %v3348_v19  ;;  %3177 = vmatpush3.bf16.msra.mxu0 %v3176_v12 }
0x108a   :  { %v2369_v60 = vpop.f32.mrb[32].mxu0 }
0x108b   :  { %v2370_v61 = vadd.f32 %v2687_v8, %v2369_v60  ;;  %v3042_v32 = vpop.f32.mrb[33].mxu0 }
0x108d   :  { %v2373_v9 = vmax.f32 %v2370_v61, 0.0 }
0x108f   :  { %3052 = vmatmul.mubr.msk.f32.vlgmr.msra.gmra.mrb[32].mxu1 %vm542_vm4, %v2373_v9 }
0x1162   :  { %v2454_v13 = vpop.f32.mrb[32].mxu1 }
0x1163   :  { %v2455_v15 = vadd.f32 %v2689_v5, %v2454_v13  ;;  %v3053_v16 = vpop.f32.mrb[33].mxu1 }
0x1165   :  { %3059 = vmatmul.mubr.msk.f32.vlgmr.msra.gmra.mrb[34].mxu0 %vm320_vm1, %v2455_v15 }
0x1166   :  { %3254 = shalt.err (!%p3251_p4)
}
0x1167   :  { %s3255_s7 = scalar_lea.hbm %s3515_s25, 32 }
0x1168   :  { %p3256_p5 = scmp.ne.s32.totalorder %s3515_s25, %s3255_s7  ;;  %p3259_p6 = scmp.lt.u32.totalorder %s3255_s7, %s3515_s25 }
0x116a   :  { %p3261_p7 = pnand %p3259_p6, %p3256_p5 }
0x116c   :  { %3264 = shalt.err (!%p3261_p7)
}
0x116d   :  { %2561 = dma.vmem_to_hbm [thread:$0]  %s2559_s1, 32, %s3515_s25, [#allocation5]  }
0x116e   :  { %s3350_s10 = smov [#allocation6]  }
0x116f   :  { %s2568_s11 = sshll.u32 %s3350_s10, 4  ;;  %s2569_s11 = int_to_ptr.vmem [resolvable:$true] %s2568_s11 }
0x1170   :  { %s3265_s15 = scalar_lea.vmem %s2569_s11, 32  ;;  %p3270_p9 = scmp.lt.s32.totalorder %s2569_s11, %s2569_s11 }
0x1171   :  { %p3266_p8 = scmp.ne.s32.totalorder %s2569_s11, %s3265_s15  ;;  %p3271_p10 = scmp.lt.s32.totalorder %s3265_s15, %s3265_s15 }
0x1173   :  { %p3272_p11 = por %p3271_p10, %p3270_p9 }
0x1175   :  { %p3273_p12 = pnand %p3272_p11, %p3266_p8 }
0x1177   :  { %3276 = shalt.err (!%p3273_p12)
}
0x1178   :  { %s3277_s16 = scalar_lea.hbm %s3520_s27, 32 }
0x1179   :  { %p3278_p13 = scmp.ne.s32.totalorder %s3520_s27, %s3277_s16  ;;  %p3281_p0 = scmp.lt.u32.totalorder %s3277_s16, %s3520_s27 }
0x117b   :  { %p3283_p1 = pnand %p3281_p0, %p3278_p13 }
0x117d   :  { %3286 = shalt.err (!%p3283_p1)
}
0x117e   :  { %2571 = dma.vmem_to_hbm [thread:$0]  %s2569_s11, 32, %s3520_s27, [#allocation5]   ;;  %v2691_v17 = vld [vmem:[%s3505_s24] ss:$0 sm:$0xff]  ;;  %vm2540_vm0 = vcmask 17408  }
0x117f   :  { %s3351_s25 = smov [#allocation2]  }
0x1180   :  { %s2548_s18 = sshll.u32 %s3351_s25, 4  ;;  %s2549_s18 = int_to_ptr.vmem [resolvable:$true] %s2548_s18 }
0x1181   :  { %s3287_s22 = scalar_lea.vmem %s2549_s18, 32  ;;  %p3292_p3 = scmp.lt.s32.totalorder %s2549_s18, %s2549_s18 }
0x1182   :  { %p3288_p2 = scmp.ne.s32.totalorder %s2549_s18, %s3287_s22  ;;  %p3293_p4 = scmp.lt.s32.totalorder %s3287_s22, %s3287_s22 }
0x1184   :  { %p3294_p5 = por %p3293_p4, %p3292_p3 }
0x1186   :  { %p3295_p6 = pnand %p3294_p5, %p3288_p2 }
0x1238   :  { %v2536_v24 = vpop.f32.mrb[34].mxu0 }
0x1239   :  { %v2537_v19 = vadd.f32 %v2691_v17, %v2536_v24  ;;  %v3060_v21 = vpop.f32.mrb[35].mxu0 }
0x123b   :  { %2541 = vst.msk [vmem:[#allocation2] sm:$0x3] %vm2540_vm0, %v2537_v19 }
0x123c   :  { %3298 = shalt.err (!%p3295_p6)
}
0x123d   :  { %s3299_s27 = scalar_lea.hbm %s3510_s21, 32 }
0x123e   :  { %p3300_p7 = scmp.ne.s32.totalorder %s3510_s21, %s3299_s27  ;;  %p3303_p8 = scmp.lt.u32.totalorder %s3299_s27, %s3510_s21 }
0x1240   :  { %p3305_p9 = pnand %p3303_p8, %p3300_p7 }
0x1242   :  { %3308 = shalt.err (!%p3305_p9)
}
0x1243   :  { %2551 = dma.vmem_to_hbm [thread:$0]  %s2549_s18, 32, %s3510_s21, [#allocation3]  }
0x1244   :  { %3309 = dma.done.wait [#allocation3], 32  }
0x1245   :  { %3310 = vsyncadd [#allocation3], 4294967264 }
0x1246   :  { %3311 = dma.done.wait [#allocation5], 64  }
0x1247   :  { %3312 = vsyncadd [#allocation5], 4294967232 }
0x1248   :  { %2581 = vsyncpa [#allocation3], 1 }
0x1249   :  { %2582 = vsyncpa [#allocation5], 1 }

</bundles_post_ra>
